<compile_context>
chip_gen: v7x
topology: tpu7x:2x2x1
jax: 0.10.0
libtpu: 0.0.40
codegen_flags: <defaults>
</compile_context>

<pallas_src>
import math

import jax
import jax.numpy as jnp
from jax.experimental import pallas as pl
from jax.experimental.pallas import tpu as pltpu

# ----------------------------- config (small) ------------------------------
B = 2              # batch
S = 8              # sequence length
H = 128            # hidden size (lane-dense)
VOCAB = 128        # vocab size (lane-dense)
NV = 8             # number of vision tokens
C = 32             # KV-cache length
I = 256            # MLP intermediate size (2I = 512 lanes for fused gate/up)
IMAGE_TOKEN_INDEX = 7
EPS = 1e-5
NEG_INF = -1e30


# ====================== fused decoder-wrapper kernel =======================
def _make_kernel(seq, cache_len, hidden, inter, merge_vision):
    def kernel(meta_ref, table_ref, vis_ref, pk_ref, pv_ref,
               wqkv_ref, wo_ref, wgu_ref, wdn_ref,
               n1_ref, n2_ref, nf_ref, lm_ref,
               logits_ref, ko_ref, vo_ref):
        # packed per-token metadata for this batch (one small VMEM block):
        #   col 0 = token id, col 1 = vision gather index (-1 = none),
        #   col 2 = image-token mask, col 3 = absolute position
        ids_col = meta_ref[:, 0:1]                       # (S, 1) int32
        img_col = meta_ref[:, 1:2]                       # (S, 1) int32
        sel_col = meta_ref[:, 2:3] != 0                  # (S, 1) bool
        pos_col = meta_ref[:, 3:4]                       # (S, 1) int32
        # first position of this block == cache write offset (contiguous pos)
        start = pos_col[0:1, 0:1]                        # (1, 1) int32

        vocab = table_ref.shape[0]
        nv = vis_ref.shape[0]

        # ---- 1) token embedding lookup (one-hot matmul, bf16 on the MXU) ----
        onehot_tok = (jax.lax.broadcasted_iota(jnp.int32, (seq, vocab), 1)
                      == ids_col).astype(jnp.bfloat16)
        embeds = jnp.dot(onehot_tok, table_ref[...],
                         preferred_element_type=jnp.float32)          # (S, H)

        # ---- 2) vision-feature gather + merge ----
        # (skipped at S==1, matching torch.where(input_ids.shape[1]==1, ...))
        if merge_vision:
            onehot_img = (jax.lax.broadcasted_iota(jnp.int32, (seq, nv), 1)
                          == img_col).astype(jnp.bfloat16)
            img_feats = jnp.dot(onehot_img, vis_ref[...],
                                preferred_element_type=jnp.float32)   # (S, H)
            x = jnp.where(sel_col, img_feats, embeds)
        else:
            x = embeds

        def rmsnorm(v, w):
            var = jnp.mean(v * v, axis=-1, keepdims=True)
            return v * jax.lax.rsqrt(var + EPS) * w

        # ---- 3) attention: fused QKV projection ----
        hidn = rmsnorm(x, n1_ref[...])
        qkv = jnp.dot(hidn.astype(jnp.bfloat16), wqkv_ref[...],
                      preferred_element_type=jnp.float32)             # (S, 3H)
        q = qkv[:, :hidden]              # Q columns pre-scaled by 1/sqrt(H)
        k = qkv[:, hidden:2 * hidden]
        v = qkv[:, 2 * hidden:]
        # TODO(synk): RoPE omitted in this single-layer stand-in; once added,
        #   the rotated K must be what gets written to the cache.

        # ---- 4) KV-cache merge IN REGISTERS + single full-block writeback ---
        k_bf = k.astype(jnp.bfloat16)
        v_bf = v.astype(jnp.bfloat16)
        row_c = jax.lax.broadcasted_iota(jnp.int32, (cache_len, seq), 0)
        col_s = jax.lax.broadcasted_iota(jnp.int32, (cache_len, seq), 1)
        # one-hot scatter matrix: sel[c, j] == 1  iff  c == start + j
        sel = ((row_c - col_s) == start).astype(jnp.bfloat16)         # (C, S)
        row1 = jax.lax.broadcasted_iota(jnp.int32, (cache_len, 1), 0)
        in_win = (row1 >= start) & (row1 < start + seq)               # (C, 1)
        k_scat = jnp.dot(sel, k_bf,
                         preferred_element_type=jnp.float32).astype(jnp.bfloat16)
        v_scat = jnp.dot(sel, v_bf,
                         preferred_element_type=jnp.float32).astype(jnp.bfloat16)
        k_cache = jnp.where(in_win, k_scat, pk_ref[...])              # (C, H)
        v_cache = jnp.where(in_win, v_scat, pv_ref[...])
        ko_ref[...] = k_cache            # one unmasked full-block bf16 store
        vo_ref[...] = v_cache

        # ---- 5) attention over this batch's cache ----
        scores = jax.lax.dot_general(
            q.astype(jnp.bfloat16), k_cache,
            (((1,), (1,)), ((), ())),
            preferred_element_type=jnp.float32)                       # (S, C)
        lane = jax.lax.broadcasted_iota(jnp.int32, (seq, cache_len), 1)
        # relies on position_ids reflecting the true cache fill (zero-init
        # cache slots beyond pos are masked out by the causal condition).
        scores = jnp.where(lane <= pos_col, scores, NEG_INF)

        m = jnp.max(scores, axis=-1, keepdims=True)
        e = jnp.exp(scores - m)
        denom = jnp.sum(e, axis=-1, keepdims=True)
        p = e * pl.reciprocal(denom, approx=True)        # EUP slot; ~1e-3 rel
        attn = jnp.dot(p.astype(jnp.bfloat16), v_cache,
                       preferred_element_type=jnp.float32)            # (S, H)
        x = x + jnp.dot(attn.astype(jnp.bfloat16), wo_ref[...],
                        preferred_element_type=jnp.float32)

        # ---- 6) SwiGLU MLP with fused gate/up projection ----
        h2 = rmsnorm(x, n2_ref[...])
        gu = jnp.dot(h2.astype(jnp.bfloat16), wgu_ref[...],
                     preferred_element_type=jnp.float32)              # (S, 2I)
        g = gu[:, :inter]
        u = gu[:, inter:]
        mlp = jnp.dot((g * jax.nn.sigmoid(g) * u).astype(jnp.bfloat16),
                      wdn_ref[...], preferred_element_type=jnp.float32)
        x = x + mlp

        # ---- 7) final norm + lm_head ----
        hf = rmsnorm(x, nf_ref[...])
        logits_ref[...] = jnp.dot(hf.astype(jnp.bfloat16), lm_ref[...],
                                  preferred_element_type=jnp.float32)

    return kernel


# ========================= wrapper forward (glue) ==========================
@jax.jit
def qeff_llama4_decoder_wrapper(input_ids, vision_embeds, position_ids,
                                image_idx, past_key_values, params):
    b, s = input_ids.shape

    # vision bookkeeping (same semantics as the torch wrapper)
    selected = input_ids == IMAGE_TOKEN_INDEX
    indices1 = jnp.cumsum(selected.astype(jnp.int32), axis=1) - 1
    indices1 = jnp.where(indices1 != -1,
                         indices1 + image_idx.astype(jnp.int32), indices1)

    # pack all per-token integer tensors into one small VMEM block (B*S, 4)
    meta = jnp.stack([input_ids.reshape(-1).astype(jnp.int32),
                      indices1.reshape(-1).astype(jnp.int32),
                      selected.reshape(-1).astype(jnp.int32),
                      position_ids.reshape(-1).astype(jnp.int32)],
                     axis=1)

    past_k, past_v = past_key_values[0]
    bsz, c, h = past_k.shape
    pk2 = past_k.astype(jnp.bfloat16).reshape(bsz * c, h)
    pv2 = past_v.astype(jnp.bfloat16).reshape(bsz * c, h)

    vocab_emb = params["embed"].shape[0]
    vocab_out = params["lm_head"].shape[1]
    inter = params["w_down"].shape[0]
    nv = vision_embeds.shape[0]
    vis_bf = vision_embeds.astype(jnp.bfloat16)

    kernel = _make_kernel(s, c, h, inter, merge_vision=(s != 1))

    resident = lambda i: (0, 0)      # weights: same block every grid step
    per_batch = lambda i: (i, 0)     # per-batch blocks

    logits2d, nk2, nv2 = pl.pallas_call(
        kernel,
        grid=(b,),
        out_shape=(jax.ShapeDtypeStruct((b * s, vocab_out), jnp.float32),
                   jax.ShapeDtypeStruct((bsz * c, h), jnp.bfloat16),
                   jax.ShapeDtypeStruct((bsz * c, h), jnp.bfloat16)),
        in_specs=[
            pl.BlockSpec((s, 4), per_batch),              # meta
            pl.BlockSpec((vocab_emb, h), resident),       # embedding table
            pl.BlockSpec((nv, h), resident),              # vision embeds (bf16)
            pl.BlockSpec((c, h), per_batch),              # past K (bf16)
            pl.BlockSpec((c, h), per_batch),              # past V (bf16)
            pl.BlockSpec((h, 3 * h), resident),           # wqkv
            pl.BlockSpec((h, h), resident),               # wo
            pl.BlockSpec((h, 2 * inter), resident),       # w_gate_up
            pl.BlockSpec((inter, h), resident),           # w_down
            pl.BlockSpec((1, h), resident),               # norm1
            pl.BlockSpec((1, h), resident),               # norm2
            pl.BlockSpec((1, h), resident),               # norm_f
            pl.BlockSpec((h, vocab_out), resident),       # lm_head
        ],
        out_specs=(
            pl.BlockSpec((s, vocab_out), per_batch),      # logits
            pl.BlockSpec((c, h), per_batch),              # new K cache
            pl.BlockSpec((c, h), per_batch),              # new V cache
        ),
        # past K/V alias the updated caches (no fresh HBM allocation).
        input_output_aliases={3: 1, 4: 2},
        compiler_params=pltpu.CompilerParams(
            dimension_semantics=("parallel",),            # 2 TCs on v7x
            vmem_limit_bytes=48 * 1024 * 1024),           # fits v7x's 64 MiB
    )(meta, params["embed"], vis_bf, pk2, pv2,
      params["wqkv"], params["wo"], params["w_gate_up"], params["w_down"],
      params["norm1"], params["norm2"], params["norm_f"], params["lm_head"])

    logits = logits2d.reshape(b, s, vocab_out)
    new_k = nk2.reshape(bsz, c, h)
    new_v = nv2.reshape(bsz, c, h)

    next_idx = (jnp.max(indices1) + 1).reshape(1, 1).astype(jnp.int32)
    image_idx_out = jnp.where(image_idx < next_idx, next_idx, image_idx)

    return logits, vision_embeds, image_idx_out, ((new_k, new_v),)


# ================================== main ===================================
def init_params(key):
    ks = jax.random.split(key, 6)
    scale = 0.02

    def w(k, shape):
        return scale * jax.random.normal(k, shape, jnp.float32)

    wqkv = w(ks[1], (H, 3 * H))
    # Fold the 1/sqrt(H) attention scale into the Q projection columns
    # (one-time weight transform; removes a per-call score multiply).
    wqkv = wqkv.at[:, :H].multiply(1.0 / math.sqrt(H))

    return {
        "embed": w(ks[0], (VOCAB, H)).astype(jnp.bfloat16),
        "wqkv": wqkv.astype(jnp.bfloat16),
        "wo": w(ks[2], (H, H)).astype(jnp.bfloat16),
        "w_gate_up": w(ks[3], (H, 2 * I)).astype(jnp.bfloat16),
        "w_down": w(ks[4], (I, H)).astype(jnp.bfloat16),
        "lm_head": w(ks[5], (H, VOCAB)).astype(jnp.bfloat16),
        "norm1": jnp.ones((1, H), jnp.float32),
        "norm2": jnp.ones((1, H), jnp.float32),
        "norm_f": jnp.ones((1, H), jnp.float32),
    }


if __name__ == "__main__":
    key = jax.random.PRNGKey(0)
    kp, ki, kv = jax.random.split(key, 3)

    params = init_params(kp)

    input_ids = jax.random.randint(ki, (B, S), 0, VOCAB, dtype=jnp.int32)
    # place some image tokens
    input_ids = input_ids.at[:, 2].set(IMAGE_TOKEN_INDEX)
    input_ids = input_ids.at[:, 3].set(IMAGE_TOKEN_INDEX)

    vision_embeds = jax.random.normal(kv, (NV, H), jnp.float32)
    position_ids = jnp.broadcast_to(jnp.arange(S, dtype=jnp.int32)[None, :],
                                    (B, S))
    image_idx = jnp.zeros((1, 1), jnp.int32)
    # KV cache stored in bf16 end-to-end (attention consumes bf16 anyway).
    past_key_values = ((jnp.zeros((B, C, H), jnp.bfloat16),
                        jnp.zeros((B, C, H), jnp.bfloat16)),)

    out = qeff_llama4_decoder_wrapper(input_ids, vision_embeds, position_ids,
                                      image_idx, past_key_values, params)
    jax.block_until_ready(out)

    logits, vis_out, image_idx_out, pkv_out = out
    assert logits.shape == (B, S, VOCAB)
    assert vis_out.shape == (NV, H)
    assert image_idx_out.shape == (1, 1)
    assert pkv_out[0][0].shape == (B, C, H)
    print("KERNEL_OK")
</pallas_src>

<mosaic_0001>
module attributes {stable_mosaic.version = 11 : i64} {
  func.func @kernel(%arg0: i32, %arg1: memref<8x4xi32, #tpu.memory_space<vmem>>, %arg2: memref<128x128xbf16, #tpu.memory_space<vmem>>, %arg3: memref<8x128xbf16, #tpu.memory_space<vmem>>, %arg4: memref<32x128xbf16, #tpu.memory_space<vmem>>, %arg5: memref<32x128xbf16, #tpu.memory_space<vmem>>, %arg6: memref<128x384xbf16, #tpu.memory_space<vmem>>, %arg7: memref<128x128xbf16, #tpu.memory_space<vmem>>, %arg8: memref<128x512xbf16, #tpu.memory_space<vmem>>, %arg9: memref<256x128xbf16, #tpu.memory_space<vmem>>, %arg10: memref<1x128xf32, #tpu.memory_space<vmem>>, %arg11: memref<1x128xf32, #tpu.memory_space<vmem>>, %arg12: memref<1x128xf32, #tpu.memory_space<vmem>>, %arg13: memref<128x128xbf16, #tpu.memory_space<vmem>>, %arg14: memref<8x128xf32, #tpu.memory_space<vmem>>, %arg15: memref<32x128xbf16, #tpu.memory_space<vmem>>, %arg16: memref<32x128xbf16, #tpu.memory_space<vmem>>) attributes {dimension_semantics = [#tpu.dimension_semantics<parallel>], iteration_bounds = array<i64: 2>, scalar_prefetch = 0 : i64, scratch_operands = 0 : i64, tpu.core_type = #tpu.core_type<tc>, window_params = [{transform_indices = @transform_0, window_bounds = array<i64: 8, 4>}, {pipeline_mode = #tpu.pipeline_mode<synchronous>, transform_indices = @transform_1, window_bounds = array<i64: 128, 128>}, {pipeline_mode = #tpu.pipeline_mode<synchronous>, transform_indices = @transform_2, window_bounds = array<i64: 8, 128>}, {transform_indices = @transform_3, window_bounds = array<i64: 32, 128>}, {transform_indices = @transform_4, window_bounds = array<i64: 32, 128>}, {pipeline_mode = #tpu.pipeline_mode<synchronous>, transform_indices = @transform_5, window_bounds = array<i64: 128, 384>}, {pipeline_mode = #tpu.pipeline_mode<synchronous>, transform_indices = @transform_6, window_bounds = array<i64: 128, 128>}, {pipeline_mode = #tpu.pipeline_mode<synchronous>, transform_indices = @transform_7, window_bounds = array<i64: 128, 512>}, {pipeline_mode = #tpu.pipeline_mode<synchronous>, transform_indices = @transform_8, window_bounds = array<i64: 256, 128>}, {pipeline_mode = #tpu.pipeline_mode<synchronous>, transform_indices = @transform_9, window_bounds = array<i64: 1, 128>}, {pipeline_mode = #tpu.pipeline_mode<synchronous>, transform_indices = @transform_10, window_bounds = array<i64: 1, 128>}, {pipeline_mode = #tpu.pipeline_mode<synchronous>, transform_indices = @transform_11, window_bounds = array<i64: 1, 128>}, {pipeline_mode = #tpu.pipeline_mode<synchronous>, transform_indices = @transform_12, window_bounds = array<i64: 128, 128>}, {transform_indices = @transform_13, window_bounds = array<i64: 8, 128>}, {transform_indices = @transform_14, window_bounds = array<i64: 32, 128>}, {transform_indices = @transform_15, window_bounds = array<i64: 32, 128>}]} {
    %c0 = arith.constant 0 : index
    %c0_0 = arith.constant 0 : index
    %0 = vector.load %arg1[%c0, %c0_0] : memref<8x4xi32, #tpu.memory_space<vmem>>, vector<8x1xi32>
    %c0_1 = arith.constant 0 : index
    %c1 = arith.constant 1 : index
    %1 = vector.load %arg1[%c0_1, %c1] : memref<8x4xi32, #tpu.memory_space<vmem>>, vector<8x1xi32>
    %c0_2 = arith.constant 0 : index
    %c2 = arith.constant 2 : index
    %2 = vector.load %arg1[%c0_2, %c2] : memref<8x4xi32, #tpu.memory_space<vmem>>, vector<8x1xi32>
    %c0_i32 = arith.constant 0 : i32
    %3 = vector.broadcast %c0_i32 : i32 to vector<8x1xi32>
    %4 = arith.cmpi ne, %2, %3 : vector<8x1xi32>
    %c0_3 = arith.constant 0 : index
    %c3 = arith.constant 3 : index
    %5 = vector.load %arg1[%c0_3, %c3] : memref<8x4xi32, #tpu.memory_space<vmem>>, vector<8x1xi32>
    %6 = vector.extract_strided_slice %5 {offsets = [0, 0], sizes = [1, 1], strides = [1, 1]} : vector<8x1xi32> to vector<1x1xi32>
    %7 = tpu.iota {dimensions = array<i32: 1>} : vector<8x128xi32>
    %8 = vector.broadcast %0 : vector<8x1xi32> to vector<8x128xi32>
    %9 = arith.cmpi eq, %7, %8 : vector<8x128xi32>
    %10 = arith.extui %9 : vector<8x128xi1> to vector<8x128xi32>
    %11 = arith.sitofp %10 : vector<8x128xi32> to vector<8x128xf32>
    %12 = arith.truncf %11 : vector<8x128xf32> to vector<8x128xbf16>
    %c0_4 = arith.constant 0 : index
    %c0_5 = arith.constant 0 : index
    %13 = vector.load %arg2[%c0_4, %c0_5] : memref<128x128xbf16, #tpu.memory_space<vmem>>, vector<128x128xbf16>
    %cst = arith.constant dense<0.000000e+00> : vector<8x128xf32>
    %14 = tpu.matmul %12, %13, %cst {dimension_numbers = #tpu.dot_dimension_numbers<[1], [0], [0], [1], [0, 0, 1, 1], [], []>} : vector<8x128xbf16>, vector<128x128xbf16>, vector<8x128xf32> -> vector<8x128xf32>
    %15 = tpu.iota {dimensions = array<i32: 1>} : vector<8x8xi32>
    %16 = vector.broadcast %1 : vector<8x1xi32> to vector<8x8xi32>
    %17 = arith.cmpi eq, %15, %16 : vector<8x8xi32>
    %18 = arith.extui %17 : vector<8x8xi1> to vector<8x8xi32>
    %19 = arith.sitofp %18 : vector<8x8xi32> to vector<8x8xf32>
    %20 = arith.truncf %19 : vector<8x8xf32> to vector<8x8xbf16>
    %c0_6 = arith.constant 0 : index
    %c0_7 = arith.constant 0 : index
    %21 = vector.load %arg3[%c0_6, %c0_7] : memref<8x128xbf16, #tpu.memory_space<vmem>>, vector<8x128xbf16>
    %cst_8 = arith.constant dense<0.000000e+00> : vector<8x128xf32>
    %22 = tpu.matmul %20, %21, %cst_8 {dimension_numbers = #tpu.dot_dimension_numbers<[1], [0], [0], [1], [0, 0, 1, 1], [], []>} : vector<8x8xbf16>, vector<8x128xbf16>, vector<8x128xf32> -> vector<8x128xf32>
    %23 = vector.shape_cast %4 : vector<8x1xi1> to vector<8x1xi1>
    %24 = vector.broadcast %23 : vector<8x1xi1> to vector<8x128xi1>
    %25 = arith.select %24, %22, %14 : vector<8x128xi1>, vector<8x128xf32>
    %c0_9 = arith.constant 0 : index
    %c0_10 = arith.constant 0 : index
    %26 = vector.load %arg10[%c0_9, %c0_10] : memref<1x128xf32, #tpu.memory_space<vmem>>, vector<1x128xf32>
    %27 = arith.mulf %25, %25 : vector<8x128xf32>
    %cst_11 = arith.constant dense<0.000000e+00> : vector<8xf32>
    %28 = vector.multi_reduction <add>, %27, %cst_11 [1] : vector<8x128xf32> to vector<8xf32>
    %29 = vector.shape_cast %28 : vector<8xf32> to vector<8x1xf32>
    %cst_12 = arith.constant 1.280000e+02 : f32
    %30 = vector.broadcast %cst_12 : f32 to vector<8x1xf32>
    %31 = arith.divf %29, %30 : vector<8x1xf32>
    %cst_13 = arith.constant 9.99999974E-6 : f32
    %32 = vector.broadcast %cst_13 : f32 to vector<8x1xf32>
    %33 = arith.addf %31, %32 : vector<8x1xf32>
    %34 = math.rsqrt %33 : vector<8x1xf32>
    %35 = vector.broadcast %34 : vector<8x1xf32> to vector<8x128xf32>
    %36 = arith.mulf %25, %35 : vector<8x128xf32>
    %37 = vector.broadcast %26 : vector<1x128xf32> to vector<8x128xf32>
    %38 = arith.mulf %36, %37 : vector<8x128xf32>
    %39 = arith.truncf %38 : vector<8x128xf32> to vector<8x128xbf16>
    %c0_14 = arith.constant 0 : index
    %c0_15 = arith.constant 0 : index
    %40 = vector.load %arg6[%c0_14, %c0_15] : memref<128x384xbf16, #tpu.memory_space<vmem>>, vector<128x384xbf16>
    %cst_16 = arith.constant dense<0.000000e+00> : vector<8x384xf32>
    %41 = tpu.matmul %39, %40, %cst_16 {dimension_numbers = #tpu.dot_dimension_numbers<[1], [0], [0], [1], [0, 0, 1, 1], [], []>} : vector<8x128xbf16>, vector<128x384xbf16>, vector<8x384xf32> -> vector<8x384xf32>
    %42 = vector.extract_strided_slice %41 {offsets = [0, 0], sizes = [8, 128], strides = [1, 1]} : vector<8x384xf32> to vector<8x128xf32>
    %43 = vector.extract_strided_slice %41 {offsets = [0, 128], sizes = [8, 128], strides = [1, 1]} : vector<8x384xf32> to vector<8x128xf32>
    %44 = vector.extract_strided_slice %41 {offsets = [0, 256], sizes = [8, 128], strides = [1, 1]} : vector<8x384xf32> to vector<8x128xf32>
    %45 = arith.truncf %43 : vector<8x128xf32> to vector<8x128xbf16>
    %46 = arith.truncf %44 : vector<8x128xf32> to vector<8x128xbf16>
    %47 = tpu.iota {dimensions = array<i32: 0>} : vector<32x8xi32>
    %48 = tpu.iota {dimensions = array<i32: 1>} : vector<32x8xi32>
    %49 = arith.subi %47, %48 : vector<32x8xi32>
    %50 = vector.broadcast %6 : vector<1x1xi32> to vector<32x8xi32>
    %51 = arith.cmpi eq, %49, %50 : vector<32x8xi32>
    %52 = arith.extui %51 : vector<32x8xi1> to vector<32x8xi32>
    %53 = arith.sitofp %52 : vector<32x8xi32> to vector<32x8xf32>
    %54 = arith.truncf %53 : vector<32x8xf32> to vector<32x8xbf16>
    %55 = tpu.iota {dimensions = array<i32: 0>} : vector<32x1xi32>
    %56 = vector.broadcast %6 : vector<1x1xi32> to vector<32x1xi32>
    %57 = arith.cmpi sge, %55, %56 : vector<32x1xi32>
    %c8_i32 = arith.constant 8 : i32
    %58 = vector.broadcast %c8_i32 : i32 to vector<1x1xi32>
    %59 = arith.addi %6, %58 : vector<1x1xi32>
    %60 = vector.broadcast %59 : vector<1x1xi32> to vector<32x1xi32>
    %61 = arith.cmpi slt, %55, %60 : vector<32x1xi32>
    %62 = arith.andi %57, %61 : vector<32x1xi1>
    %cst_17 = arith.constant dense<0.000000e+00> : vector<32x128xf32>
    %63 = tpu.matmul %54, %45, %cst_17 {dimension_numbers = #tpu.dot_dimension_numbers<[1], [0], [0], [1], [0, 0, 1, 1], [], []>} : vector<32x8xbf16>, vector<8x128xbf16>, vector<32x128xf32> -> vector<32x128xf32>
    %64 = arith.truncf %63 : vector<32x128xf32> to vector<32x128xbf16>
    %cst_18 = arith.constant dense<0.000000e+00> : vector<32x128xf32>
    %65 = tpu.matmul %54, %46, %cst_18 {dimension_numbers = #tpu.dot_dimension_numbers<[1], [0], [0], [1], [0, 0, 1, 1], [], []>} : vector<32x8xbf16>, vector<8x128xbf16>, vector<32x128xf32> -> vector<32x128xf32>
    %66 = arith.truncf %65 : vector<32x128xf32> to vector<32x128xbf16>
    %c0_19 = arith.constant 0 : index
    %c0_20 = arith.constant 0 : index
    %67 = vector.load %arg4[%c0_19, %c0_20] : memref<32x128xbf16, #tpu.memory_space<vmem>>, vector<32x128xbf16>
    %68 = vector.shape_cast %62 : vector<32x1xi1> to vector<32x1xi1>
    %69 = vector.broadcast %68 : vector<32x1xi1> to vector<32x128xi1>
    %70 = arith.select %69, %64, %67 : vector<32x128xi1>, vector<32x128xbf16>
    %c0_21 = arith.constant 0 : index
    %c0_22 = arith.constant 0 : index
    %71 = vector.load %arg5[%c0_21, %c0_22] : memref<32x128xbf16, #tpu.memory_space<vmem>>, vector<32x128xbf16>
    %72 = vector.shape_cast %62 : vector<32x1xi1> to vector<32x1xi1>
    %73 = vector.broadcast %72 : vector<32x1xi1> to vector<32x128xi1>
    %74 = arith.select %73, %66, %71 : vector<32x128xi1>, vector<32x128xbf16>
    %c0_23 = arith.constant 0 : index
    %c0_24 = arith.constant 0 : index
    %75 = vector.load %arg15[%c0_23, %c0_24] : memref<32x128xbf16, #tpu.memory_space<vmem>>, vector<32x128xbf16>
    tpu.vector_store %arg15[%c0_23, %c0_24], %70 {strides = array<i32>} : memref<32x128xbf16, #tpu.memory_space<vmem>>, vector<32x128xbf16>,
    %c0_25 = arith.constant 0 : index
    %c0_26 = arith.constant 0 : index
    %76 = vector.load %arg16[%c0_25, %c0_26] : memref<32x128xbf16, #tpu.memory_space<vmem>>, vector<32x128xbf16>
    tpu.vector_store %arg16[%c0_25, %c0_26], %74 {strides = array<i32>} : memref<32x128xbf16, #tpu.memory_space<vmem>>, vector<32x128xbf16>,
    %77 = arith.truncf %42 : vector<8x128xf32> to vector<8x128xbf16>
    %cst_27 = arith.constant dense<0.000000e+00> : vector<8x32xf32>
    %78 = tpu.matmul %77, %70, %cst_27 {dimension_numbers = #tpu.dot_dimension_numbers<[1], [1], [0], [0], [0, 0, 1, 0], [], []>} : vector<8x128xbf16>, vector<32x128xbf16>, vector<8x32xf32> -> vector<8x32xf32>
    %79 = tpu.iota {dimensions = array<i32: 1>} : vector<8x32xi32>
    %80 = vector.broadcast %5 : vector<8x1xi32> to vector<8x32xi32>
    %81 = arith.cmpi sle, %79, %80 : vector<8x32xi32>
    %cst_28 = arith.constant -1.000000e+30 : f32
    %82 = vector.broadcast %cst_28 : f32 to vector<8x32xf32>
    %83 = arith.select %81, %78, %82 : vector<8x32xi1>, vector<8x32xf32>
    %cst_29 = arith.constant dense<0xFF800000> : vector<8xf32>
    %84 = vector.multi_reduction <maximumf>, %83, %cst_29 [1] : vector<8x32xf32> to vector<8xf32>
    %85 = vector.shape_cast %84 : vector<8xf32> to vector<8x1xf32>
    %86 = vector.broadcast %85 : vector<8x1xf32> to vector<8x32xf32>
    %87 = arith.subf %83, %86 : vector<8x32xf32>
    %88 = math.exp %87 : vector<8x32xf32>
    %cst_30 = arith.constant dense<0.000000e+00> : vector<8xf32>
    %89 = vector.multi_reduction <add>, %88, %cst_30 [1] : vector<8x32xf32> to vector<8xf32>
    %90 = vector.shape_cast %89 : vector<8xf32> to vector<8x1xf32>
    %91 = tpu.reciprocal %90 {approx = true} : vector<8x1xf32> -> vector<8x1xf32>
    %92 = vector.broadcast %91 : vector<8x1xf32> to vector<8x32xf32>
    %93 = arith.mulf %88, %92 : vector<8x32xf32>
    %94 = arith.truncf %93 : vector<8x32xf32> to vector<8x32xbf16>
    %cst_31 = arith.constant dense<0.000000e+00> : vector<8x128xf32>
    %95 = tpu.matmul %94, %74, %cst_31 {dimension_numbers = #tpu.dot_dimension_numbers<[1], [0], [0], [1], [0, 0, 1, 1], [], []>} : vector<8x32xbf16>, vector<32x128xbf16>, vector<8x128xf32> -> vector<8x128xf32>
    %96 = arith.truncf %95 : vector<8x128xf32> to vector<8x128xbf16>
    %c0_32 = arith.constant 0 : index
    %c0_33 = arith.constant 0 : index
    %97 = vector.load %arg7[%c0_32, %c0_33] : memref<128x128xbf16, #tpu.memory_space<vmem>>, vector<128x128xbf16>
    %cst_34 = arith.constant dense<0.000000e+00> : vector<8x128xf32>
    %98 = tpu.matmul %96, %97, %cst_34 {dimension_numbers = #tpu.dot_dimension_numbers<[1], [0], [0], [1], [0, 0, 1, 1], [], []>} : vector<8x128xbf16>, vector<128x128xbf16>, vector<8x128xf32> -> vector<8x128xf32>
    %99 = arith.addf %25, %98 : vector<8x128xf32>
    %c0_35 = arith.constant 0 : index
    %c0_36 = arith.constant 0 : index
    %100 = vector.load %arg11[%c0_35, %c0_36] : memref<1x128xf32, #tpu.memory_space<vmem>>, vector<1x128xf32>
    %101 = arith.mulf %99, %99 : vector<8x128xf32>
    %cst_37 = arith.constant dense<0.000000e+00> : vector<8xf32>
    %102 = vector.multi_reduction <add>, %101, %cst_37 [1] : vector<8x128xf32> to vector<8xf32>
    %103 = vector.shape_cast %102 : vector<8xf32> to vector<8x1xf32>
    %cst_38 = arith.constant 1.280000e+02 : f32
    %104 = vector.broadcast %cst_38 : f32 to vector<8x1xf32>
    %105 = arith.divf %103, %104 : vector<8x1xf32>
    %cst_39 = arith.constant 9.99999974E-6 : f32
    %106 = vector.broadcast %cst_39 : f32 to vector<8x1xf32>
    %107 = arith.addf %105, %106 : vector<8x1xf32>
    %108 = math.rsqrt %107 : vector<8x1xf32>
    %109 = vector.broadcast %108 : vector<8x1xf32> to vector<8x128xf32>
    %110 = arith.mulf %99, %109 : vector<8x128xf32>
    %111 = vector.broadcast %100 : vector<1x128xf32> to vector<8x128xf32>
    %112 = arith.mulf %110, %111 : vector<8x128xf32>
    %113 = arith.truncf %112 : vector<8x128xf32> to vector<8x128xbf16>
    %c0_40 = arith.constant 0 : index
    %c0_41 = arith.constant 0 : index
    %114 = vector.load %arg8[%c0_40, %c0_41] : memref<128x512xbf16, #tpu.memory_space<vmem>>, vector<128x512xbf16>
    %cst_42 = arith.constant dense<0.000000e+00> : vector<8x512xf32>
    %115 = tpu.matmul %113, %114, %cst_42 {dimension_numbers = #tpu.dot_dimension_numbers<[1], [0], [0], [1], [0, 0, 1, 1], [], []>} : vector<8x128xbf16>, vector<128x512xbf16>, vector<8x512xf32> -> vector<8x512xf32>
    %116 = vector.extract_strided_slice %115 {offsets = [0, 0], sizes = [8, 256], strides = [1, 1]} : vector<8x512xf32> to vector<8x256xf32>
    %117 = vector.extract_strided_slice %115 {offsets = [0, 256], sizes = [8, 256], strides = [1, 1]} : vector<8x512xf32> to vector<8x256xf32>
    %118 = arith.negf %116 : vector<8x256xf32>
    %119 = math.exp %118 : vector<8x256xf32>
    %cst_43 = arith.constant 1.000000e+00 : f32
    %120 = vector.broadcast %cst_43 : f32 to vector<8x256xf32>
    %121 = arith.addf %120, %119 : vector<8x256xf32>
    %122 = arith.divf %120, %121 : vector<8x256xf32>
    %123 = arith.mulf %116, %122 : vector<8x256xf32>
    %124 = arith.mulf %123, %117 : vector<8x256xf32>
    %125 = arith.truncf %124 : vector<8x256xf32> to vector<8x256xbf16>
    %c0_44 = arith.constant 0 : index
    %c0_45 = arith.constant 0 : index
    %126 = vector.load %arg9[%c0_44, %c0_45] : memref<256x128xbf16, #tpu.memory_space<vmem>>, vector<256x128xbf16>
    %cst_46 = arith.constant dense<0.000000e+00> : vector<8x128xf32>
    %127 = tpu.matmul %125, %126, %cst_46 {dimension_numbers = #tpu.dot_dimension_numbers<[1], [0], [0], [1], [0, 0, 1, 1], [], []>} : vector<8x256xbf16>, vector<256x128xbf16>, vector<8x128xf32> -> vector<8x128xf32>
    %128 = arith.addf %99, %127 : vector<8x128xf32>
    %c0_47 = arith.constant 0 : index
    %c0_48 = arith.constant 0 : index
    %129 = vector.load %arg12[%c0_47, %c0_48] : memref<1x128xf32, #tpu.memory_space<vmem>>, vector<1x128xf32>
    %130 = arith.mulf %128, %128 : vector<8x128xf32>
    %cst_49 = arith.constant dense<0.000000e+00> : vector<8xf32>
    %131 = vector.multi_reduction <add>, %130, %cst_49 [1] : vector<8x128xf32> to vector<8xf32>
    %132 = vector.shape_cast %131 : vector<8xf32> to vector<8x1xf32>
    %cst_50 = arith.constant 1.280000e+02 : f32
    %133 = vector.broadcast %cst_50 : f32 to vector<8x1xf32>
    %134 = arith.divf %132, %133 : vector<8x1xf32>
    %cst_51 = arith.constant 9.99999974E-6 : f32
    %135 = vector.broadcast %cst_51 : f32 to vector<8x1xf32>
    %136 = arith.addf %134, %135 : vector<8x1xf32>
    %137 = math.rsqrt %136 : vector<8x1xf32>
    %138 = vector.broadcast %137 : vector<8x1xf32> to vector<8x128xf32>
    %139 = arith.mulf %128, %138 : vector<8x128xf32>
    %140 = vector.broadcast %129 : vector<1x128xf32> to vector<8x128xf32>
    %141 = arith.mulf %139, %140 : vector<8x128xf32>
    %142 = arith.truncf %141 : vector<8x128xf32> to vector<8x128xbf16>
    %c0_52 = arith.constant 0 : index
    %c0_53 = arith.constant 0 : index
    %143 = vector.load %arg13[%c0_52, %c0_53] : memref<128x128xbf16, #tpu.memory_space<vmem>>, vector<128x128xbf16>
    %cst_54 = arith.constant dense<0.000000e+00> : vector<8x128xf32>
    %144 = tpu.matmul %142, %143, %cst_54 {dimension_numbers = #tpu.dot_dimension_numbers<[1], [0], [0], [1], [0, 0, 1, 1], [], []>} : vector<8x128xbf16>, vector<128x128xbf16>, vector<8x128xf32> -> vector<8x128xf32>
    %c0_55 = arith.constant 0 : index
    %c0_56 = arith.constant 0 : index
    %145 = vector.load %arg14[%c0_55, %c0_56] : memref<8x128xf32, #tpu.memory_space<vmem>>, vector<8x128xf32>
    tpu.vector_store %arg14[%c0_55, %c0_56], %144 {strides = array<i32>} : memref<8x128xf32, #tpu.memory_space<vmem>>, vector<8x128xf32>,
    return
  }
  func.func @transform_0(%arg0: i32) -> (i32, i32) {
    %c0_i32 = arith.constant 0 : i32
    %c0_i32_0 = arith.constant 0 : i32
    return %arg0, %c0_i32 : i32, i32
  }
  func.func @transform_1(%arg0: i32) -> (i32, i32) {
    %c0_i32 = arith.constant 0 : i32
    %c0_i32_0 = arith.constant 0 : i32
    %c0_i32_1 = arith.constant 0 : i32
    return %c0_i32, %c0_i32_0 : i32, i32
  }
  func.func @transform_2(%arg0: i32) -> (i32, i32) {
    %c0_i32 = arith.constant 0 : i32
    %c0_i32_0 = arith.constant 0 : i32
    %c0_i32_1 = arith.constant 0 : i32
    return %c0_i32, %c0_i32_0 : i32, i32
  }
  func.func @transform_3(%arg0: i32) -> (i32, i32) {
    %c0_i32 = arith.constant 0 : i32
    %c0_i32_0 = arith.constant 0 : i32
    return %arg0, %c0_i32 : i32, i32
  }
  func.func @transform_4(%arg0: i32) -> (i32, i32) {
    %c0_i32 = arith.constant 0 : i32
    %c0_i32_0 = arith.constant 0 : i32
    return %arg0, %c0_i32 : i32, i32
  }
  func.func @transform_5(%arg0: i32) -> (i32, i32) {
    %c0_i32 = arith.constant 0 : i32
    %c0_i32_0 = arith.constant 0 : i32
    %c0_i32_1 = arith.constant 0 : i32
    return %c0_i32, %c0_i32_0 : i32, i32
  }
  func.func @transform_6(%arg0: i32) -> (i32, i32) {
    %c0_i32 = arith.constant 0 : i32
    %c0_i32_0 = arith.constant 0 : i32
    %c0_i32_1 = arith.constant 0 : i32
    return %c0_i32, %c0_i32_0 : i32, i32
  }
  func.func @transform_7(%arg0: i32) -> (i32, i32) {
    %c0_i32 = arith.constant 0 : i32
    %c0_i32_0 = arith.constant 0 : i32
    %c0_i32_1 = arith.constant 0 : i32
    return %c0_i32, %c0_i32_0 : i32, i32
  }
  func.func @transform_8(%arg0: i32) -> (i32, i32) {
    %c0_i32 = arith.constant 0 : i32
    %c0_i32_0 = arith.constant 0 : i32
    %c0_i32_1 = arith.constant 0 : i32
    return %c0_i32, %c0_i32_0 : i32, i32
  }
  func.func @transform_9(%arg0: i32) -> (i32, i32) {
    %c0_i32 = arith.constant 0 : i32
    %c0_i32_0 = arith.constant 0 : i32
    %c0_i32_1 = arith.constant 0 : i32
    return %c0_i32, %c0_i32_0 : i32, i32
  }
  func.func @transform_10(%arg0: i32) -> (i32, i32) {
    %c0_i32 = arith.constant 0 : i32
    %c0_i32_0 = arith.constant 0 : i32
    %c0_i32_1 = arith.constant 0 : i32
    return %c0_i32, %c0_i32_0 : i32, i32
  }
  func.func @transform_11(%arg0: i32) -> (i32, i32) {
    %c0_i32 = arith.constant 0 : i32
    %c0_i32_0 = arith.constant 0 : i32
    %c0_i32_1 = arith.constant 0 : i32
    return %c0_i32, %c0_i32_0 : i32, i32
  }
  func.func @transform_12(%arg0: i32) -> (i32, i32) {
    %c0_i32 = arith.constant 0 : i32
    %c0_i32_0 = arith.constant 0 : i32
    %c0_i32_1 = arith.constant 0 : i32
    return %c0_i32, %c0_i32_0 : i32, i32
  }
  func.func @transform_13(%arg0: i32) -> (i32, i32) {
    %c0_i32 = arith.constant 0 : i32
    %c0_i32_0 = arith.constant 0 : i32
    return %arg0, %c0_i32 : i32, i32
  }
  func.func @transform_14(%arg0: i32) -> (i32, i32) {
    %c0_i32 = arith.constant 0 : i32
    %c0_i32_0 = arith.constant 0 : i32
    return %arg0, %c0_i32 : i32, i32
  }
  func.func @transform_15(%arg0: i32) -> (i32, i32) {
    %c0_i32 = arith.constant 0 : i32
    %c0_i32_0 = arith.constant 0 : i32
    return %arg0, %c0_i32 : i32, i32
  }
}

</mosaic_0001>

<bundles_post_ra>
// kernel: qeff_llama4_decoder_wrapper.1
= control target key start
LH: loop header
LB: loop body
LE: loop exit
PB: predicated region body
PF: predicated region fallthrough
CT: control target
= control target key end

     0   :  { %s4018_s0 = inlined_call_operand.vmem [shape: s32[16,4], index: 0, kind: input, shape index: {}]   ;;  %s4019_s1 = inlined_call_operand.hbm [shape: bf16[128,128], index: 1, kind: input, shape index: {}]   ;;  %s4020_s2 = inlined_call_operand.vmem [shape: bf16[8,128], index: 2, kind: input, shape index: {}]   ;;  %s4021_s3 = inlined_call_operand.vmem [shape: bf16[64,128], index: 3, kind: input, shape index: {}, may-alias: {3,14}]   ;;  %s4022_s4 = inlined_call_operand.vmem [shape: bf16[64,128], index: 4, kind: input, shape index: {}, may-alias: {4,15}]   ;;  %s4023_s5 = inlined_call_operand.vmem [shape: bf16[128,384], index: 5, kind: input, shape index: {}]   ;;  %s4024_s6 = inlined_call_operand.hbm [shape: bf16[128,128], index: 6, kind: input, shape index: {}]   ;;  %s4025_s7 = inlined_call_operand.hbm [shape: bf16[128,512], index: 7, kind: input, shape index: {}]   ;;  %s4026_s8 = inlined_call_operand.hbm [shape: bf16[256,128], index: 8, kind: input, shape index: {}]   ;;  %s4027_s9 = inlined_call_operand.hbm [shape: f32[1,128], index: 9, kind: input, shape index: {}]   ;;  %s4028_s10 = inlined_call_operand.hbm [shape: f32[1,128], index: 10, kind: input, shape index: {}]   ;;  %s4029_s11 = inlined_call_operand.hbm [shape: f32[1,128], index: 11, kind: input, shape index: {}]   ;;  %s4030_s12 = inlined_call_operand.hbm [shape: bf16[128,128], index: 12, kind: input, shape index: {}]   ;;  %s4031_s13 = inlined_call_operand.hbm [shape: f32[16,128], index: 13, kind: output, shape index: {0}]   ;;  %s4032_s14 = inlined_call_operand.vmem [shape: bf16[64,128], index: 14, kind: output, shape index: {1}, may-alias: {3,14}]   ;;  %s4033_s15 = inlined_call_operand.vmem [shape: bf16[64,128], index: 15, kind: output, shape index: {2}, may-alias: {4,15}]  }
   0x1   :  { %4050 = sst [smem:[#allocation31_spill]] %s4019_s1 }
   0x2   :  { %4051 = sst [smem:[#allocation32_spill]] %s4024_s6 }
   0x3   :  { %4052 = sst [smem:[#allocation33_spill]] %s4026_s8 }
   0x4   :  { %4053 = sst [smem:[#allocation34_spill]] %s4031_s13 }
   0x5   :  { %4054 = sst [smem:[#allocation35_spill]] %s4032_s14 }
   0x6   :  { %4055 = sst [smem:[#allocation36_spill]] %s4033_s15 }
   0x7   :  { %21 = vsyncpa [#allocation3], 0 }
   0x8   :  { %22 = vsyncpa [#allocation6], 0 }
   0x9   :  { %23 = vsyncpa [#allocation9], 0 }
   0xa   :  { %24 = vsyncpa [#allocation12], 0 }
   0xb   :  { %25 = vsyncpa [#allocation15], 0 }
   0xc   :  { %26 = vsyncpa [#allocation4], 0 }
   0xd   :  { %28 = vsyncpa [#allocation4 + $0x1], 0  ;;  %s3472_s18 = smov 0   ;;  %s3474_s19 = smov 0  }
   0xe   :  { %s3476_s20 = smov 0   ;;  %s3478_s21 = smov 0  }
   0xf LB: > { %4056 = sst [smem:[#allocation23_spill]] %s3357_s18  ;;  %s3493_s22 = sadd.s32 4294967295, %s3369_s21   ;;  %s3369_s21 = sphi %s3478_s21, %s4099_s21   ;;  %s3365_s20 = sphi %s3476_s20, %s4102_s20   ;;  %s3361_s19 = sphi %s3474_s19, %s4101_s19   ;;  %s3357_s18 = sphi %s3472_s18, %s4100_s18  }
  0x10   : > { %4057 = sst [smem:[#allocation24_spill]] %s3361_s19  ;;  %s2432_s23 = sadd.s32 4294967294, %s3369_s21  }
  0x11   : > { %4058 = sst [smem:[#allocation25_spill]] %s3365_s20  ;;  %s3497_s24 = sadd.s32 1, %s3369_s21  }
  0x12   : > { %4059 = sst [smem:[#allocation26_spill]] %s3369_s21  ;;  %s329_s25 = sadd.s32 1, %s3365_s20 }
  0x13   : > { %4060 = sst [smem:[#allocation27_spill]] %s3497_s24  ;;  %s326_s26 = ssub.s32 %s3369_s21, %s3497_s24 }
  0x14   : > { %p339_p0 = scmp.ne.s32.totalorder %s3365_s20, %s3361_s19  ;;  %p327_p1 = scmp.eq.s32.totalorder %s326_s26, 0 }
  0x15   : > { %p340_p2 = scmp.eq.s32.totalorder %s3493_s22, 1  ;;  %p345_p3 = scmp.ne.s32.totalorder %s3361_s19, %s3357_s18 }
  0x16   : > { %p346_p4 = scmp.eq.s32.totalorder %s2432_s23, 1  ;;  %p2433_p7 = scmp.ge.s32.totalorder %s3369_s21, 1 }
  0x17   : > { %s3508_s27 = scalar_select %p327_p1, %s3365_s20, %s329_s25  }
  0x18   : > { %p3510_p5 = por %p340_p2, %p339_p0  ;;  %p3514_p6 = por %p346_p4, %p345_p3 }
  0x19   : > { %4061 = sst [smem:[#allocation28_spill]] %s3508_s27  ;;  %p405_p8 = scmp.lt.s32.totalorder %s3369_s21, 3 }
  0x1a   : > { %s4062_s28 = scalar_select %p3510_p5, 1, 0 }
  0x1b   : > { %s4064_s29 = scalar_select %p3514_p6, 1, 0 }
  0x1c   : > { %4063 = sst [smem:[#allocation29_spill]] %s4062_s28  ;;  %p4041_p9 = scmp.eq.s32.totalorder %s3493_s22, 0 }
  0x1d   : > { %4065 = sst [smem:[#allocation30_spill]] %s4064_s29  ;;  %p3521_p10 = pnand %p2433_p7, %p405_p8 }
  0x1e   : > { %s3371_s16 = smov [#allocation5]   ;;  %s3372_s25 = smov [#allocation8]  }
  0x1f   : > { %s4066_s30 = scalar_select %p3521_p10, 1, 0 }
  0x20   : > { %p2819_p11 = pneg %p3521_p10  ;;  %s436_s17 = sshll.u32 %s3371_s16, 4  ;;  %s3527_s17 = int_to_ptr.vmem [resolvable:$true] %s436_s17 }
  0x21   : > { %s462_s26 = sshll.u32 %s3372_s25, 4  ;;  %s3373_s27 = smov [#allocation11]   ;;  %s3535_s26 = int_to_ptr.vmem [resolvable:$true] %s462_s26 }
  0x22   : > { %p3531_p12 = pnand %p4041_p9, %p2819_p11  ;;  %s3537_s20 = sshll.u32 %s3373_s27, 4  ;;  %s488_s20 = int_to_ptr.vmem [resolvable:$true] %s3537_s20 }
  0x23   : > { %s4068_s6 = sld [smem:[#allocation32_spill]] }
  0x24   : > { %p3547_p0 = pneg %p3531_p12 }
  0x29   : > { %s3063_s18 = scalar_lea.hbm %s4068_s6, 1024 }
  0x2a   : > { %p3064_p13 = scmp.ne.s32.totalorder %s4068_s6, %s3063_s18  ;;  %p3070_p3 = scmp.lt.u32.totalorder %s3063_s18, %s4068_s6 }
  0x2c   : > { %p3066_p1 = pnand %p3547_p0, %p3064_p13 }
  0x2e   : > { %p3067_p2 = pneg %p3066_p1 }
  0x30   : > { %p3072_p4 = pnand %p3070_p3, %p3067_p2 }
  0x32   : > { %3075 = shalt.err (!%p3072_p4)
}
  0x33   : > { %s3076_s21 = scalar_lea.vmem %s3527_s17, 1024  ;;  %p3084_p9 = scmp.lt.s32.totalorder %s3527_s17, %s3527_s17 }
  0x34   : > { %p3077_p7 = scmp.ne.s32.totalorder %s3527_s17, %s3076_s21  ;;  %p3085_p6 = scmp.lt.s32.totalorder %s3076_s21, %s3076_s21 }
  0x36   : > { %p3079_p8 = pnand %p3077_p7, %p3547_p0  ;;  %p3086_p13 = por %p3085_p6, %p3084_p9 }
  0x38   : > { %p3080_p11 = pneg %p3079_p8 }
  0x3a   : > { %p3087_p1 = pnand %p3086_p13, %p3080_p11 }
  0x3c   : > { %3090 = shalt.err (!%p3087_p1)
}
  0x3d   : > { %s4047_s24 = smov 64   ;;  %s4049_s18 = smov 4  }
  0x3e   : > { %2825 = dma.hbm_to_vmem [thread:$0]  (!%p3531_p12), %s4068_s6, 1024, %s3527_s17, [#allocation6], %s4047_s24, %s4047_s24, %s4049_s18  }
  0x3f   : > { %s4070_s8 = sld [smem:[#allocation33_spill]] }
  0x45   : > { %s3091_s21 = scalar_lea.hbm %s4070_s8, 2048 }
  0x46   : > { %p3092_p6 = scmp.ne.s32.totalorder %s4070_s8, %s3091_s21  ;;  %p3098_p3 = scmp.lt.u32.totalorder %s3091_s21, %s4070_s8 }
  0x48   : > { %p3094_p9 = pnand %p3092_p6, %p3547_p0 }
  0x4a   : > { %p3095_p2 = pneg %p3094_p9 }
  0x4c   : > { %p3100_p4 = pnand %p3098_p3, %p3095_p2 }
  0x4e   : > { %3103 = shalt.err (!%p3100_p4)
}
  0x4f   : > { %s3104_s17 = scalar_lea.vmem %s3535_s26, 2048  ;;  %p3112_p13 = scmp.lt.s32.totalorder %s3535_s26, %s3535_s26 }
  0x50   : > { %p3105_p7 = scmp.ne.s32.totalorder %s3535_s26, %s3104_s17  ;;  %p3113_p1 = scmp.lt.s32.totalorder %s3104_s17, %s3104_s17 }
  0x52   : > { %p3107_p8 = pnand %p3105_p7, %p3547_p0  ;;  %p3114_p6 = por %p3113_p1, %p3112_p13 }
  0x54   : > { %p3108_p11 = pneg %p3107_p8 }
  0x56   : > { %p3115_p9 = pnand %p3114_p6, %p3108_p11 }
  0x58   : > { %3118 = shalt.err (!%p3115_p9)
}
  0x59   : > { %2831 = dma.hbm_to_vmem [thread:$0]  (!%p3531_p12), %s4070_s8, 2048, %s3535_s26, [#allocation9], %s4047_s24, %s4047_s24, %s4049_s18  }
  0x5a   : > { %s3119_s29 = scalar_lea.hbm %s4028_s10, 16 }
  0x5b   : > { %p3120_p2 = scmp.ne.s32.totalorder %s4028_s10, %s3119_s29  ;;  %p3126_p7 = scmp.lt.u32.totalorder %s3119_s29, %s4028_s10 }
  0x5d   : > { %p3122_p3 = pnand %p3120_p2, %p3547_p0 }
  0x5f   : > { %p3123_p4 = pneg %p3122_p3 }
  0x61   : > { %p3128_p8 = pnand %p3126_p7, %p3123_p4 }
  0x63   : > { %3131 = shalt.err (!%p3128_p8)
}
  0x64   : > { %s3132_s17 = scalar_lea.vmem %s488_s20, 16  ;;  %s3139_s26 = scalar_lea.vmem %s488_s20, 32 }
  0x65   : > { %p3133_p11 = scmp.ne.s32.totalorder %s488_s20, %s3132_s17  ;;  %p3140_p6 = scmp.lt.s32.totalorder %s488_s20, %s488_s20 }
  0x66   : > { %p3141_p9 = scmp.lt.s32.totalorder %s3139_s26, %s3132_s17 }
  0x67   : > { %p3135_p13 = pnand %p3133_p11, %p3547_p0 }
  0x68   : > { %p3142_p5 = por %p3141_p9, %p3140_p6 }
  0x69   : > { %p3136_p1 = pneg %p3135_p13 }
  0x6b   : > { %p3143_p10 = pnand %p3142_p5, %p3136_p1 }
  0x6d   : > { %3146 = shalt.err (!%p3143_p10)
}
  0x6e   : > { %2837 = dma.hbm_to_vmem [thread:$0]  (!%p3531_p12), %s4028_s10, 16, %s488_s20, [#allocation12]  }
  0x6f   : > { %s3376_s19 = smov [#allocation2]   ;;  %s3377_s29 = smov [#allocation7]  }
  0x70   : > { %s417_s28 = sshll.u32 %s3376_s19, 4  ;;  %s449_s16 = sshll.u32 %s3377_s29, 4  ;;  %s418_s28 = int_to_ptr.vmem [resolvable:$true] %s417_s28  ;;  %s450_s16 = int_to_ptr.vmem [resolvable:$true] %s449_s16 }
  0x71   : > { %s4071_s1 = sld [smem:[#allocation31_spill]] }
  0x77   : > { %s3147_s21 = scalar_lea.hbm %s4071_s1, 1024 }
  0x78   : > { %p3148_p5 = scmp.ne.s32.totalorder %s4071_s1, %s3147_s21  ;;  %p3154_p3 = scmp.lt.u32.totalorder %s3147_s21, %s4071_s1 }
  0x7a   : > { %p3150_p10 = pnand %p3148_p5, %p3547_p0 }
  0x7c   : > { %p3151_p2 = pneg %p3150_p10 }
  0x7e   : > { %p3156_p4 = pnand %p3154_p3, %p3151_p2 }
  0x80   : > { %3159 = shalt.err (!%p3156_p4)
}
  0x81   : > { %s3160_s20 = scalar_lea.vmem %s418_s28, 1024  ;;  %p3168_p13 = scmp.lt.s32.totalorder %s418_s28, %s418_s28 }
  0x82   : > { %p3161_p7 = scmp.ne.s32.totalorder %s418_s28, %s3160_s20  ;;  %p3169_p1 = scmp.lt.s32.totalorder %s3160_s20, %s3160_s20 }
  0x84   : > { %p3163_p8 = pnand %p3161_p7, %p3547_p0  ;;  %p3170_p6 = por %p3169_p1, %p3168_p13 }
  0x86   : > { %p3164_p11 = pneg %p3163_p8 }
  0x88   : > { %p3171_p9 = pnand %p3170_p6, %p3164_p11 }
  0x8a   : > { %3174 = shalt.err (!%p3171_p9)
}
  0x8b   : > { %s4072_s15 = smov 64   ;;  %s3175_s27 = scalar_lea.hbm %s4025_s7, 4096 }
  0x8c   : > { %2822 = dma.hbm_to_vmem [thread:$0]  (!%p3531_p12), %s4071_s1, 1024, %s418_s28, [#allocation3], %s4072_s15, %s4072_s15, %s4049_s18  }
  0x8d   : > { %p3176_p5 = scmp.ne.s32.totalorder %s4025_s7, %s3175_s27  ;;  %p3182_p3 = scmp.lt.u32.totalorder %s3175_s27, %s4025_s7 }
  0x8f   : > { %p3178_p10 = pnand %p3176_p5, %p3547_p0 }
  0x91   : > { %p3179_p2 = pneg %p3178_p10 }
  0x93   : > { %p3184_p4 = pnand %p3182_p3, %p3179_p2 }
  0x95   : > { %3187 = shalt.err (!%p3184_p4)
}
  0x96   : > { %s3188_s20 = scalar_lea.vmem %s450_s16, 4096  ;;  %p3196_p13 = scmp.lt.s32.totalorder %s450_s16, %s450_s16 }
  0x97   : > { %p3189_p7 = scmp.ne.s32.totalorder %s450_s16, %s3188_s20  ;;  %p3197_p1 = scmp.lt.s32.totalorder %s3188_s20, %s3188_s20 }
  0x99   : > { %p3191_p8 = pnand %p3189_p7, %p3547_p0  ;;  %p3198_p6 = por %p3197_p1, %p3196_p13 }
  0x9b   : > { %p3192_p11 = pneg %p3191_p8 }
  0x9d   : > { %p3199_p9 = pnand %p3198_p6, %p3192_p11 }
  0x9f   : > { %3202 = shalt.err (!%p3199_p9)
}
  0xa0   : > { %s3378_s28 = smov 256   ;;  %s3379_s24 = smov 16  }
  0xa1   : > { %2828 = dma.hbm_to_vmem [thread:$0]  (!%p3531_p12), %s4025_s7, 4096, %s450_s16, [#allocation6], %s3378_s28, %s3378_s28, %s3379_s24  }
  0xa2   : > { %s3380_s25 = smov [#allocation10]   ;;  %s3381_s21 = smov [#allocation13]  }
  0xa3   : > { %s476_s27 = sshll.u32 %s3380_s25, 4  ;;  %s498_s17 = sshll.u32 %s3381_s21, 4  ;;  %s477_s27 = int_to_ptr.vmem [resolvable:$true] %s476_s27  ;;  %s499_s17 = int_to_ptr.vmem [resolvable:$true] %s498_s17 }
  0xa4   : > { %s3203_s20 = scalar_lea.hbm %s4027_s9, 16 }
  0xa5   : > { %p3204_p5 = scmp.ne.s32.totalorder %s4027_s9, %s3203_s20  ;;  %p3210_p3 = scmp.lt.u32.totalorder %s3203_s20, %s4027_s9 }
  0xa7   : > { %p3206_p10 = pnand %p3204_p5, %p3547_p0 }
  0xa9   : > { %p3207_p2 = pneg %p3206_p10 }
  0xab   : > { %p3212_p4 = pnand %p3210_p3, %p3207_p2 }
  0xad   : > { %3215 = shalt.err (!%p3212_p4)
}
  0xae   : > { %s3216_s16 = scalar_lea.vmem %s477_s27, 16  ;;  %s3223_s28 = scalar_lea.vmem %s477_s27, 32 }
  0xaf   : > { %p3217_p7 = scmp.ne.s32.totalorder %s477_s27, %s3216_s16  ;;  %p3224_p13 = scmp.lt.s32.totalorder %s477_s27, %s477_s27 }
  0xb0   : > { %p3225_p1 = scmp.lt.s32.totalorder %s3223_s28, %s3216_s16 }
  0xb1   : > { %p3219_p8 = pnand %p3217_p7, %p3547_p0 }
  0xb2   : > { %p3226_p6 = por %p3225_p1, %p3224_p13 }
  0xb3   : > { %p3220_p11 = pneg %p3219_p8 }
  0xb5   : > { %p3227_p9 = pnand %p3226_p6, %p3220_p11 }
  0xb7   : > { %3230 = shalt.err (!%p3227_p9)
}
  0xb8   : > { %2834 = dma.hbm_to_vmem [thread:$0]  (!%p3531_p12), %s4027_s9, 16, %s477_s27, [#allocation9]  }
  0xb9   : > { %s3231_s24 = scalar_lea.hbm %s4029_s11, 16 }
  0xba   : > { %p3232_p5 = scmp.ne.s32.totalorder %s4029_s11, %s3231_s24  ;;  %p3238_p3 = scmp.lt.u32.totalorder %s3231_s24, %s4029_s11 }
  0xbc   : > { %p3234_p10 = pnand %p3232_p5, %p3547_p0 }
  0xbe   : > { %p3235_p2 = pneg %p3234_p10 }
  0xc0   : > { %p3240_p4 = pnand %p3238_p3, %p3235_p2 }
  0xc2   : > { %3243 = shalt.err (!%p3240_p4)
}
  0xc3   : > { %s3244_s26 = scalar_lea.vmem %s499_s17, 16  ;;  %s3251_s27 = scalar_lea.vmem %s499_s17, 32 }
  0xc4   : > { %p3245_p7 = scmp.ne.s32.totalorder %s499_s17, %s3244_s26  ;;  %p3252_p13 = scmp.lt.s32.totalorder %s499_s17, %s499_s17 }
  0xc5   : > { %p3253_p1 = scmp.lt.s32.totalorder %s3251_s27, %s3244_s26 }
  0xc6   : > { %p3247_p8 = pnand %p3245_p7, %p3547_p0 }
  0xc7   : > { %p3254_p6 = por %p3253_p1, %p3252_p13 }
  0xc8   : > { %p3248_p11 = pneg %p3247_p8 }
  0xca   : > { %p3255_p9 = pnand %p3254_p6, %p3248_p11 }
  0xcc   : > { %3258 = shalt.err (!%p3255_p9)
}
  0xcd   : > { %2840 = dma.hbm_to_vmem [thread:$0]  (!%p3531_p12), %s4029_s11, 16, %s499_s17, [#allocation12]  }
  0xce   : > { %s3382_s16 = smov [#allocation14]   ;;  %s3259_s6 = scalar_lea.hbm %s4030_s12, 1024 }
  0xcf   : > { %s508_s28 = sshll.u32 %s3382_s16, 4  ;;  %p3260_p5 = scmp.ne.s32.totalorder %s4030_s12, %s3259_s6  ;;  %s509_s28 = int_to_ptr.vmem [resolvable:$true] %s508_s28 }
  0xd0   : > { %p3266_p3 = scmp.lt.u32.totalorder %s3259_s6, %s4030_s12 }
  0xd1   : > { %p3262_p10 = pnand %p3260_p5, %p3547_p0 }
  0xd3   : > { %p3263_p2 = pneg %p3262_p10 }
  0xd5   : > { %p3268_p4 = pnand %p3266_p3, %p3263_p2 }
  0xd7   : > { %3271 = shalt.err (!%p3268_p4)
}
  0xd8   : > { %s3272_s17 = scalar_lea.vmem %s509_s28, 1024  ;;  %p3280_p13 = scmp.lt.s32.totalorder %s509_s28, %s509_s28 }
  0xd9   : > { %p3273_p7 = scmp.ne.s32.totalorder %s509_s28, %s3272_s17  ;;  %p3281_p1 = scmp.lt.s32.totalorder %s3272_s17, %s3272_s17 }
  0xdb   : > { %p3275_p8 = pnand %p3273_p7, %p3547_p0  ;;  %p3282_p6 = por %p3281_p1, %p3280_p13 }
  0xdd   : > { %p3276_p11 = pneg %p3275_p8 }
  0xdf   : > { %p3283_p9 = pnand %p3282_p6, %p3276_p11 }
  0xe1   : > { %3286 = shalt.err (!%p3283_p9)
}
  0xe2   : > { %s4073_s25 = smov 4   ;;  %p4074_p5 = scmp.ne.s32.totalorder %s4066_s30, 0 }
  0xe3   : > { %2843 = dma.hbm_to_vmem [thread:$0]  (!%p3531_p12), %s4030_s12, 1024, %s509_s28, [#allocation15], %s4072_s15, %s4072_s15, %s4073_s25  }
  0xe4   : > { %549 = sbr.rel (%p4074_p5) target bundleno = 3197 (0xc7d), region = 72  ;;  %p4075_p0 = scmp.eq.s32.totalorder (!%p4074_p5), %s3493_s22, 0 }
  0xeb   : > { %3332 = dma.done.wait (%p4075_p0), [#allocation3], 1024   ;;  %p4076_p10 = pmov %p4075_p0 }
  0xec   : > { %p4077_p2 = pmov %p4075_p0 }
  0xed   : > { %3334 = vsyncadd (%p4076_p10), [#allocation3], 4294966272 }
  0xee   : > { %3336 = dma.done.wait (%p4077_p2), [#allocation6], 5120   ;;  %p4078_p3 = pmov %p4075_p0 }
  0xef   : > { %p4079_p4 = pmov %p4075_p0 }
  0xf0   : > { %3338 = vsyncadd (%p4078_p3), [#allocation6], 4294962176 }
  0xf1   : > { %3340 = dma.done.wait (%p4079_p4), [#allocation9], 2064   ;;  %p4080_p12 = pmov %p4075_p0 }
  0xf2   : > { %p4081_p7 = pmov %p4075_p0 }
  0xf3   : > { %3342 = vsyncadd (%p4080_p12), [#allocation9], 4294965232 }
  0xf4   : > { %3344 = dma.done.wait (%p4081_p7), [#allocation12], 32   ;;  %p4082_p8 = pmov %p4075_p0 }
  0xf5   : > { %p4083_p11 = pmov %p4075_p0 }
  0xf6   : > { %3346 = vsyncadd (%p4082_p8), [#allocation12], 4294967264 }
  0xf7   : > { %3348 = dma.done.wait (%p4083_p11), [#allocation15], 1024   ;;  %p4084_p13 = pmov %p4075_p0 }
  0xf8   : > { %p644_p1 = scmp.lt.s32.totalorder %s3493_s22, 1  ;;  %v3383_v0 = vmov 1   ;;  %v3384_v1 = vmov 0.0   ;;  %v2921_v3 = vld [vmem:[#allocation2] sm:$0xff]   ;;  %v2922_v4 = vld [vmem:[#allocation2 + $0x8] sm:$0xff]   ;;  %vm3385_vm0 = vmmov 0   ;;  %v677_v16 = vlaneseq }
  0xf9   : > { %3350 = vsyncadd (%p4084_p13), [#allocation15], 4294966272  ;;  %2917 = vset.pattern.permute.xlu0 %v3383_v0  ;;  %2667 = vmatprep.subr.bf16.mxu0 %v3384_v1  ;;  %v3386_v5 = vmov 0   ;;  %vm802_vm1 = vcmask 1043456   ;;  %v2923_v6 = vld [vmem:[#allocation2 + $0x10] sm:$0xff]   ;;  %v2924_v9 = vld [vmem:[#allocation2 + $0x18] sm:$0xff]  }
  0xfa   : > { %s645_s13 = scalar_select %p644_p1, %s3493_s22, 1  ;;  %2687 = vmatprep.subr.bf16.mxu1 %v3384_v1  ;;  %2668 = vmatpush3.bf16.msra.mxu0 %v2921_v3  ;;  %v797_v7 = vld [vmem:[%s4020_s2] sm:$0xf]  ;;  %v3387_v10 = vmov 2   ;;  %v2926_v13 = vld [vmem:[#allocation2 + $0x28] sm:$0xff]   ;;  %v2927_v14 = vld [vmem:[#allocation2 + $0x30] sm:$0xff]  }
  0xfb   : > { %2669 = vmatprep.subr.bf16.mxu0 %v3384_v1  ;;  %2689 = vmatprep.mubr.msk.bf16.mxu1 %vm3385_vm0, %v3384_v1  ;;  %v804_v8 = vsel %vm802_vm1, %v797_v7, 0  ;;  %v2925_v12 = vld [vmem:[#allocation2 + $0x20] sm:$0xff]   ;;  %v2928_v15 = vld [vmem:[#allocation2 + $0x38] sm:$0xff]   ;;  %v3765_v17 = vand.u32 127, %v677_v16  ;;  %vm798_vm4 = vcmask 64512   ;;  %s3389_s29 = smov 125  }
  0xfc   : > { %s2453_s30 = sshll.u32 %s645_s13, 3  ;;  %2683 = vmatprep.mubr.msk.bf16.mxu0 %vm3385_vm0, %v3384_v1  ;;  %2688 = vmatpush3.bf16.msra.mxu1 %v804_v8  ;;  %v3388_v22 = vmov 1.0|1.0   ;;  %v2929_v23 = vld [vmem:[%s4023_s5] ss:$12 sps:$4 sm:$0xff]   ;;  %s2454_s25 = sshll.u32 %s3493_s22, 2 }
  0xfd   : > { %s647_s27 = scalar_lea.vmem %s4018_s0, %s2453_s30  ;;  %2919 = vset.pattern.permute.xlu1 %v3387_v10  ;;  %v2931_v24 = vld [vmem:[%s4023_s5 + $0x4] ss:$12 sps:$4 sm:$0xff]   ;;  %v2932_v25 = vld [vmem:[%s4023_s5 + $0x8] ss:$12 sps:$4 sm:$0xff]   ;;  %v2936_v27 = vld [vmem:[%s4023_s5 + $0x20] ss:$12 sps:$4 sm:$0xff]  }
  0xfe   : > { %v3741_v2 = vld [vmem:[%s647_s27] sm:$0xff]  ;;  %2670 = vmatpush3.bf16.msra.mxu0 %v2922_v4  ;;  %v2935_v26 = vld [vmem:[%s4023_s5 + $0x1c] ss:$12 sps:$4 sm:$0xff]   ;;  %1029 = vmatprep.subr.bf16.mxu1 %v2931_v24  ;;  %v2943_v43 = vld [vmem:[%s4023_s5 + $0x4c] ss:$12 sps:$4 sm:$0xff]   ;;  %v3390_v24 = vmov 3  }
  0xff   : > { %791 = vperm.xlu0 %2917, %v3741_v2   ;;  %2671 = vmatprep.subr.bf16.mxu0 %v3384_v1  ;;  %vm676_vm2 = vcmp.ne.s32.totalorder %v3741_v2, 0  ;;  %v2933_v28 = vld [vmem:[%s4023_s5 + $0x18] ss:$12 sps:$4 sm:$0xff]   ;;  %v2939_v29 = vld [vmem:[%s4023_s5 + $0x34] ss:$12 sps:$4 sm:$0xff]   ;;  %p649_p6 = scmp.lt.s32.totalorder %s2454_s25, 7 }
 0x100   : > { %v846_v11 = vsel %vm676_vm2, 1, %v3386_v5  ;;  %v2940_v30 = vld [vmem:[%s4023_s5 + $0x38] ss:$12 sps:$4 sm:$0xff]   ;;  %v2937_v31 = vld [vmem:[%s4023_s5 + $0x30] ss:$12 sps:$4 sm:$0xff]   ;;  %s4089_s16 = sld [smem:[#allocation35_spill]] }
 0x101   : > { %848 = vperm.xlu1 %2919, %v846_v11   ;;  %v2941_v44 = vld [vmem:[%s4023_s5 + $0x48] ss:$12 sps:$4 sm:$0xff]   ;;  %v2944_v45 = vld [vmem:[%s4023_s5 + $0x50] ss:$12 sps:$4 sm:$0xff]   ;;  %v2945_v47 = vld [vmem:[%s4023_s5 + $0x60] ss:$12 sps:$4 sm:$0xff]  }
 0x102   : > { %2672 = vmatpush3.bf16.msra.mxu0 %v2923_v6  ;;  %v2947_v46 = vld [vmem:[%s4023_s5 + $0x64] ss:$12 sps:$4 sm:$0xff]   ;;  %v2948_v48 = vld [vmem:[%s4023_s5 + $0x68] ss:$12 sps:$4 sm:$0xff]   ;;  %v2952_v51 = vld [vmem:[%s4023_s5 + $0x80] ss:$12 sps:$4 sm:$0xff]  }
 0x103   : > { %2918 = vset.pattern.permute.xlu0 %v3386_v5  ;;  %2673 = vmatprep.subr.bf16.mxu0 %v3384_v1  ;;  %v2951_v49 = vld [vmem:[%s4023_s5 + $0x7c] ss:$12 sps:$4 sm:$0xff]   ;;  %v2949_v50 = vld [vmem:[%s4023_s5 + $0x78] ss:$12 sps:$4 sm:$0xff]   ;;  %v2955_v52 = vld [vmem:[%s4023_s5 + $0x94] ss:$12 sps:$4 sm:$0xff]  }
 0x104   : > { %680 = vperm.xlu0 %2918, %v3741_v2   ;;  %v2953_v53 = vld [vmem:[%s4023_s5 + $0x90] ss:$12 sps:$4 sm:$0xff]   ;;  %v2956_v54 = vld [vmem:[%s4023_s5 + $0x98] ss:$12 sps:$4 sm:$0xff]   ;;  %v2957_v56 = vld [vmem:[%s4023_s5 + $0xa8] ss:$12 sps:$4 sm:$0xff]  }
 0x105   : > { %v2959_v55 = vld [vmem:[%s4023_s5 + $0xac] ss:$12 sps:$4 sm:$0xff]   ;;  %v2960_v57 = vld [vmem:[%s4023_s5 + $0xb0] ss:$12 sps:$4 sm:$0xff]   ;;  %v2475_v63 = vld [vmem:[#allocation10] ss:$0 sm:$0xff] }
 0x106   : > { %2674 = vmatpush3.bf16.msra.mxu0 %v2924_v9  ;;  %v1113_v6 = vshrl.u32 %v677_v16, 7  ;;  %s4104_s25 = smov (!%p649_p6, %s2454_s25), 7  ;;  %s4090_s6 = sld [smem:[#allocation36_spill]] }
 0x107   : > { %2675 = vmatprep.subr.bf16.mxu0 %v3384_v1  ;;  %s3892_s21 = sshll.u32 %s4104_s25, 2  ;;  %s4091_s24 = sld [smem:[#allocation24_spill]] }
 0x108   : > { %1121 = vrot.lane.b32.xlu0 %v3741_v2, %s3389_s29  ;;  %v1114_v7 = vadd.s32 8, %v1113_v6  ;;  %v1115_v8 = vadd.s32 16, %v1113_v6  ;;  %v1116_v9 = vadd.s32 24, %v1113_v6  ;;  %v1117_v10 = vsub.s32 %v1113_v6, %v3765_v17  ;;  %s652_s30 = scalar_lea.vmem %s4021_s3, %s3892_s21  ;;  %s3902_s27 = scalar_lea.vmem %s4022_s4, %s3892_s21 }
 0x109   : > { %2920 = vset.pattern.permute.xlu0 %v3390_v24  ;;  %s664_s28 = scalar_lea.vmem %s4089_s16, %s3892_s21  ;;  %s4092_s19 = sld [smem:[#allocation29_spill]] }
 0x10a   : > { %2676 = vmatpush3.bf16.msra.mxu0 %v2925_v12  ;;  %v1118_v11 = vsub.s32 %v1114_v7, %v3765_v17  ;;  %v1119_v12 = vsub.s32 %v1115_v8, %v3765_v17  ;;  %s2592_s26 = sshll.u32 %s3493_s22, 7  ;;  %s4093_s23 = sld [smem:[#allocation34_spill]] }
 0x10b   : > { %2677 = vmatprep.subr.bf16.mxu0 %v3384_v1  ;;  %s3391_s22 = smov [#allocation16]  }
 0x10c   : > { %s670_s8 = scalar_lea.vmem %s4090_s6, %s3892_s21  ;;  %s3291_s20 = sshll.u32 %s3391_s22, 4  ;;  %s3292_s20 = int_to_ptr.vmem [resolvable:$false] %s3291_s20 }
 0x10d   : > { %s627_s29 = sand.u32 1, %s4091_s24   ;;  %s3293_s16 = scalar_lea.vmem %s3292_s20, 256 }
 0x10e   : > { %2678 = vmatpush3.bf16.msra.mxu0 %v2926_v13  ;;  %v1120_v13 = vsub.s32 %v1116_v9, %v3765_v17 }
 0x10f   : > { %2679 = vmatprep.subr.bf16.mxu0 %v3384_v1  ;;  %p4094_p5 = scmp.ne.s32.totalorder %s4092_s19, 0 }
 0x110   : > { %s3978_s15 = scalar_lea.hbm %s4093_s23, %s2592_s26 }
 0x112   : > { %2680 = vmatpush3.bf16.msra.mxu0 %v2927_v14 }
 0x113   : > { %2681 = vmatprep.subr.bf16.mxu0 %v3384_v1 }
 0x116   : > { %2682 = vmatpush3.bf16.msra.mxu0 %v2928_v15 }
 0x117   : > { %2693 = vmatprep.subr.bf16.mxu0 %v3384_v1 }
 0x17e   : > { %v792_v18 = vpop.permute.xlu0 %791 }
 0x17f   : > { %vm793_vm3 = vcmp.eq.s32.totalorder %v3765_v17, %v792_v18 }
 0x180   : > { %v2473_v19 = vsel %vm793_vm3, 1.0, %v3384_v1  ;;  %v849_v32 = vpop.permute.xlu1 %848 }
 0x181   : > { %v796_v20 = vpack.c.bf16 %v2473_v19, %v2473_v19  ;;  %vm850_vm7 = vcmp.eq.s32.totalorder %v849_v32, 1 }
 0x183   : > { %2690 = vmatmul.mubr.msk.bf16.vlgmr.msra.gmra.mrb[0].mxu1 %vm798_vm4, %v796_v20  ;;  %v681_v21 = vpop.permute.xlu0 %680 }
 0x184   : > { %vm682_vm5 = vcmp.eq.s32.totalorder %v3765_v17, %v681_v21  ;;  %1061 = vmatprep.mubr.bf16.mxu1 %v3386_v5  ;;  %1030 = vmatpush1.bf16.msra.mxu1 %v2929_v23  ;;  %v1147_v23 = vadd.s32 8, %v3741_v2 }
 0x185   : > { %vm2471_vm6 = vmpackc.low %vm682_vm5, %vm682_vm5  ;;  %1031 = vmatprep.subr.bf16.mxu1 %v2935_v26 }
 0x186   : > { %2684 = vmatmul.mubr.msk.bf16.vlgmr.msra.gmra.mrb[0].mxu0 %vm2471_vm6, %v3388_v22  ;;  %v1141_v22 = vsub.s32 0, %v1113_v6 }
 0x187   : > { %2709 = vmatprep.mubr.msk.bf16.mxu0 %vm3385_vm0, %v3384_v1  ;;  %2694 = vmatpush3.bf16.msra.mxu0 %v2932_v25  ;;  %v1122_v61 = vpop.permute.xlu0 %1121 }
 0x188   : > { %2695 = vmatprep.subr.bf16.mxu0 %v3384_v1  ;;  %1032 = vmatpush1.bf16.msra.mxu1 %v2933_v28  ;;  %2783 = vpush %v1122_v61  ;;  %v1142_v25 = vrot.slane %v3741_v2, %v1141_v22  ;;  %v1151_v26 = vrot.slane %v1147_v23, %v1141_v22 }
 0x189   : > { %1033 = vmatprep.subr.bf16.mxu1 %v2939_v29 }
 0x18a   : > { %vm1143_vm12 = vcmp.ge.s32.totalorder %v1113_v6, %v1142_v25  ;;  %vm1152_vm13 = vcmp.lt.s32.totalorder %v1113_v6, %v1151_v26  ;;  %vm1144_vm14 = vcmp.ge.s32.totalorder %v1114_v7, %v1142_v25  ;;  %vm1153_vm15 = vcmp.lt.s32.totalorder %v1114_v7, %v1151_v26 }
 0x18b   : > { %2696 = vmatpush3.bf16.msra.mxu0 %v2936_v27  ;;  %vm1156_vm2 = vmand %vm1143_vm12, %vm1152_vm13  ;;  %vm1145_vm5 = vcmp.ge.s32.totalorder %v1115_v8, %v1142_v25  ;;  %vm1154_vm6 = vcmp.lt.s32.totalorder %v1115_v8, %v1151_v26 }
 0x18c   : > { %2697 = vmatprep.subr.bf16.mxu0 %v3384_v1  ;;  %1034 = vmatpush1.bf16.msra.mxu1 %v2937_v31  ;;  %v1278_v27 = vsel %vm1156_vm2, 1, %v3386_v5  ;;  %vm1157_vm3 = vmand %vm1144_vm14, %vm1153_vm15 }
 0x18d   : > { %1035 = vmatprep.subr.bf16.mxu1 %v2943_v43  ;;  %1283 = vperm.xlu0 %2920, %v1278_v27   ;;  %v1279_v28 = vsel %vm1157_vm3, 1, %v3386_v5 }
 0x18f   : > { %2698 = vmatpush3.bf16.msra.mxu0 %v2940_v30 }
 0x190   : > { %2699 = vmatprep.subr.bf16.mxu0 %v3384_v1  ;;  %1036 = vmatpush1.bf16.msra.mxu1 %v2941_v44 }
 0x191   : > { %1037 = vmatprep.subr.bf16.mxu1 %v2947_v46  ;;  %1286 = vperm.xlu0 %2920, %v1279_v28  }
 0x193   : > { %2700 = vmatpush3.bf16.msra.mxu0 %v2944_v45 }
 0x194   : > { %2701 = vmatprep.subr.bf16.mxu0 %v3384_v1  ;;  %1038 = vmatpush1.bf16.msra.mxu1 %v2945_v47 }
 0x195   : > { %1039 = vmatprep.subr.bf16.mxu1 %v2951_v49 }
 0x197   : > { %2702 = vmatpush3.bf16.msra.mxu0 %v2948_v48 }
 0x198   : > { %2703 = vmatprep.subr.bf16.mxu0 %v3384_v1  ;;  %1040 = vmatpush1.bf16.msra.mxu1 %v2949_v50 }
 0x199   : > { %1041 = vmatprep.subr.bf16.mxu1 %v2955_v52 }
 0x19b   : > { %2704 = vmatpush3.bf16.msra.mxu0 %v2952_v51 }
 0x19c   : > { %2705 = vmatprep.subr.bf16.mxu0 %v3384_v1  ;;  %1042 = vmatpush1.bf16.msra.mxu1 %v2953_v53 }
 0x19d   : > { %1043 = vmatprep.subr.bf16.mxu1 %v2959_v55  ;;  %v2962_v55 = vld [vmem:[%s652_s30 + $0x8] sm:$0xff]  }
 0x19f   : > { %2706 = vmatpush3.bf16.msra.mxu0 %v2956_v54 }
 0x1a0   : > { %2707 = vmatprep.subr.bf16.mxu0 %v3384_v1  ;;  %1044 = vmatpush1.bf16.msra.mxu1 %v2957_v56 }
 0x1a3   : > { %2708 = vmatpush3.bf16.msra.mxu0 %v2960_v57  ;;  %v2961_v57 = vld [vmem:[%s652_s30] sm:$0xff]  }
 0x1a4   : > { %2725 = vmatprep.subr.bf16.mxu0 %v3384_v1 }
 0x1b9   : > { %s2784_s17 = spop %2783 }
 0x1ba   : > { %v1124_v14 = vstv %s2784_s17  ;;  %s2452_s17 = sshll.u32 %s627_s29, 3 }
 0x1bb   : > { %vm1125_vm8 = vcmp.eq.s32.totalorder %v1117_v10, %v1124_v14  ;;  %vm1126_vm9 = vcmp.eq.s32.totalorder %v1118_v11, %v1124_v14  ;;  %vm1127_vm10 = vcmp.eq.s32.totalorder %v1119_v12, %v1124_v14  ;;  %vm1128_vm11 = vcmp.eq.s32.totalorder %v1120_v13, %v1124_v14  ;;  %v2963_v12 = vld [vmem:[%s3902_s27] sm:$0xff]   ;;  %s629_s25 = scalar_lea.vmem [#allocation16], %s2452_s17 }
 0x1bc   : > { %v2500_v15 = vsel %vm1125_vm8, 1.0, %v3384_v1  ;;  %v2501_v16 = vsel %vm1126_vm9, 1.0, %v3384_v1  ;;  %v2502_v18 = vsel %vm1127_vm10, 1.0, %v3384_v1  ;;  %v2503_v19 = vsel %vm1128_vm11, 1.0, %v3384_v1  ;;  %s2212_s21 = sshll.u32 %s629_s25, 4  ;;  %s3973_s21 = int_to_ptr.vmem [resolvable:$true] %s2212_s21 }
 0x1bd   : > { %v1137_v20 = vpack.c.bf16 %v2501_v16, %v2500_v15  ;;  %v1138_v21 = vpack.c.bf16 %v2503_v19, %v2502_v18  ;;  %vm1146_vm8 = vcmp.ge.s32.totalorder %v1116_v9, %v1142_v25  ;;  %vm1155_vm9 = vcmp.lt.s32.totalorder %v1116_v9, %v1151_v26  ;;  %v2964_v9 = vld [vmem:[%s3902_s27 + $0x8] sm:$0xff]   ;;  %s2189_s27 = scalar_lea.sflag [#allocation4], %s627_s29  ;;  %s3287_s14 = scalar_lea.vmem %s3973_s21, 128 }
 0x1be   : > { %vm1159_vm10 = vmand %vm1146_vm8, %vm1155_vm9  ;;  %p3288_p9 = scmp.ne.s32.totalorder %s3973_s21, %s3287_s14  ;;  %p3294_p2 = scmp.lt.s32.totalorder %s3973_s21, %s3292_s20 }
 0x1bf   : > { %v1281_v30 = vsel %vm1159_vm10, 1, %v3386_v5  ;;  %p3295_p3 = scmp.lt.s32.totalorder %s3293_s16, %s3287_s14 }
 0x1c0   : > { %p3289_p0 = pnand %p3288_p9, %p4094_p5 }
 0x1c1   : > { %p3296_p4 = por %p3295_p3, %p3294_p2 }
 0x1c2   : > { %p3290_p10 = pneg %p3289_p0 }
 0x1c4   : > { %p3297_p12 = pnand %p3296_p4, %p3290_p10 }
 0x20c   : > { %v1284_v43 = vpop.permute.xlu0 %1283 }
 0x210   : > { %v1287_v44 = vpop.permute.xlu0 %1286 }
 0x211   : > { %vm1295_vm13 = vcmp.eq.s32.totalorder %v1287_v44, 1 }
 0x212   : > { %vm1299_vm2 = vmpackc.low %vm1295_vm13, %vm1295_vm13 }
 0x213   : > { %v1303_v50 = vsel %vm1299_vm2, 65537, %v3386_v5 }
 0x256   : > { %v840_v33 = vpop.f32.mrb[0].mxu1 }
 0x257   : > { %v2691_v34 = vpop.f32.mrb[1].mxu1 }
 0x258   : > { %v843_v35 = vpop.f32.mrb[2].mxu1 }
 0x259   : > { %v784_v36 = vpop.f32.mrb[0].mxu0  ;;  %v2692_v37 = vpop.f32.mrb[3].mxu1 }
 0x25a   : > { %v3804_v38 = vsel %vm850_vm7, %v840_v33, %v784_v36  ;;  %v2685_v39 = vpop.f32.mrb[1].mxu0  ;;  %vm1158_vm7 = vmand %vm1145_vm5, %vm1154_vm6  ;;  %vm1428_vm6 = vcmask 261120  }
 0x25b   : > { %v787_v40 = vpop.f32.mrb[2].mxu0  ;;  %v853_v41 = vmul.f32 %v3804_v38, %v3804_v38  ;;  %v1280_v29 = vsel %vm1158_vm7, 1, %v3386_v5 }
 0x25c   : > { %v2686_v42 = vpop.f32.mrb[3].mxu0  ;;  %1289 = vperm.xlu0 %2920, %v1280_v29  }
 0x25d   : > { %854 = vadd.xlane.f32.xlu1 %v853_v41 }
 0x260   : > { %1292 = vperm.xlu0 %2920, %v1281_v30  }
 0x264   : > { %1424 = vperm.xlu0 %2920, %v3741_v2  }
 0x2db   : > { %v1290_v45 = vpop.permute.xlu0 %1289 }
 0x2df   : > { %v1293_v46 = vpop.permute.xlu0 %1292 }
 0x2e0   : > { %vm1297_vm11 = vcmp.eq.s32.totalorder %v1293_v46, 1  ;;  %v2972_v46 = vld [vmem:[#allocation5 + $0x38] sm:$0xff]  }
 0x2e1   : > { %vm1301_vm15 = vmpackc.low %vm1297_vm11, %vm1297_vm11 }
 0x2e2   : > { %v1305_v48 = vsel %vm1301_vm15, 65537, %v3386_v5 }
 0x2e3   : > { %v1425_v24 = vpop.permute.xlu0 %1424 }
 0x2e4   : > { %vm1426_vm7 = vcmp.le.s32.totalorder %v3765_v17, %v1425_v24  ;;  %v2967_v17 = vld [vmem:[#allocation5 + $0x10] sm:$0xff]  }
 0x2e5   : > { %v3017_v24 = vld [vmem:[#allocation7 + $0xe4] ss:$16 sps:$4 sm:$0xff]  }
 0x2ea   : > { %v855_v58 = vpop.xlane.xlu1 %854 }
 0x2eb   : > { %v857_v59 = vmul.f32 0.0078125, %v855_v58 }
 0x2ed   : > { %v858_v60 = vadd.f32 1e-05, %v857_v59 }
 0x2ef   : > { %3045 = vrsqrt.f32 %v858_v60  ;;  %v2987_v60 = vld [vmem:[#allocation7 + $0x44] ss:$16 sps:$4 sm:$0xff]  }
 0x2f9   : > { %v3046_v62 = vpop.eup %3045 }
 0x2fa   : > { %v860_v0 = vmul.f32 %v3046_v62, %v3804_v38  ;;  %v2985_v62 = vld [vmem:[#allocation7 + $0x40] ss:$16 sps:$4 sm:$0xff]  }
 0x2fc   : > { %v867_v3 = vmul.f32 %v2475_v63, %v860_v0 }
 0x2fe   : > { %v868_v4 = vpack.c.bf16 %v867_v3, %v867_v3 }
 0x300   : > { %1062 = vmatmul.mubr.bf16.vlgmr.msra.gmra.mrb[4].mxu1 %v868_v4  ;;  %2710 = vmatmul.mubr.bf16.vlgmr.msra.gmra.mrb[4].mxu0 %v868_v4 }
 0x301   : > { %2729 = vmatprep.mubr.msk.bf16.mxu0 %vm3385_vm0, %v3384_v1  ;;  %2715 = vmatprep.mubr.msk.bf16.mxu1 %vm798_vm4, %v1137_v20 }
 0x3d3   : > { %v3879_v31 = vpop.f32.mrb[4].mxu1  ;;  %v1104_v32 = vpop.f32.mrb[4].mxu0 }
 0x3d4   : > { %v1065_v33 = vpop.f32.mrb[5].mxu1  ;;  %v2711_v34 = vpop.f32.mrb[5].mxu0  ;;  %v1111_v41 = vpack.c.bf16 %v1104_v32, %v1104_v32  ;;  %v1382_v23 = vpack.c.bf16 %v3879_v31, %v3879_v31 }
 0x3d5   : > { %v1110_v35 = vpack.c.bf16 %v1065_v33, %v1065_v33  ;;  %v1067_v36 = vpop.f32.mrb[6].mxu1  ;;  %v1107_v37 = vpop.f32.mrb[6].mxu0 }
 0x3d6   : > { %v1068_v39 = vpop.f32.mrb[7].mxu1  ;;  %v2712_v40 = vpop.f32.mrb[7].mxu0  ;;  %v1221_v2 = vsel %vm802_vm1, %v1111_v41, 0  ;;  %v2965_v36 = vld [vmem:[#allocation5] sm:$0xff]   ;;  %v2966_v37 = vld [vmem:[#allocation5 + $0x8] sm:$0xff]  }
 0x3d7   : > { %v1167_v42 = vsel %vm802_vm1, %v1110_v35, 0  ;;  %2781 = vmatprep.subr.msk.bf16.mxu1 %vm802_vm1, %v1110_v35  ;;  %v2968_v39 = vld [vmem:[#allocation5 + $0x18] sm:$0xff]   ;;  %v2969_v40 = vld [vmem:[#allocation5 + $0x20] sm:$0xff]  }
 0x3d8   : > { %2714 = vmatpush3.bf16.msra.mxu1 %v1167_v42  ;;  %v2971_v42 = vld [vmem:[#allocation5 + $0x30] sm:$0xff]  }
 0x3d9   : > { %2782 = vmatprep.subr.msk.bf16.mxu1 %vm802_vm1, %v1111_v41  ;;  %vm1294_vm1 = vcmp.eq.s32.totalorder %v1284_v43, 1  ;;  %v2970_v41 = vld [vmem:[#allocation5 + $0x28] sm:$0xff]  }
 0x3da   : > { %vm1298_vm12 = vmpackc.low %vm1294_vm1, %vm1294_vm1 }
 0x3db   : > { %2716 = vmatmul.mubr.msk.bf16.vlgmr.msra.gmra.mrb[8].mxu1 %vm798_vm4, %v1138_v21  ;;  %v1302_v49 = vsel %vm1298_vm12, 65537, %v3386_v5 }
 0x3dc   : > { %2720 = vmatpush3.bf16.msra.mxu1 %v1221_v2  ;;  %2721 = vmatprep.mubr.msk.bf16.mxu1 %vm798_vm4, %v1137_v20  ;;  %v2508_v53 = vcombine.low %v1302_v49, %v1303_v50 }
 0x3dd   : > { %2741 = vmatprep.subr.bf16.mxu1 %v3384_v1 }
 0x3de   : > { %vm3912_vm5 = vcmp.ne.s16.totalorder %v2508_v53, 0  ;;  %v2975_v53 = vld [vmem:[#allocation7 + $0x4] ss:$16 sps:$4 sm:$0xff]  }
 0x3e3   : > { %2722 = vmatmul.mubr.msk.bf16.vlgmr.msra.gmra.mrb[12].mxu1 %vm798_vm4, %v1138_v21  ;;  %vm1296_vm4 = vcmp.eq.s32.totalorder %v1290_v45, 1 }
 0x3e4   : > { %2757 = vmatprep.mubr.msk.bf16.mxu1 %vm3385_vm0, %v3384_v1  ;;  %vm1300_vm14 = vmpackc.low %vm1296_vm4, %vm1296_vm4  ;;  %2742 = vmatpush3.bf16.msra.mxu1 %v2965_v36  ;;  %v3021_v36 = vld [vmem:[#allocation8 + $0x40] sm:$0xff]  }
 0x3e5   : > { %v1304_v47 = vsel %vm1300_vm14, 65537, %v3386_v5  ;;  %2743 = vmatprep.subr.bf16.mxu1 %v3384_v1 }
 0x3e6   : > { %v2509_v51 = vcombine.low %v1304_v47, %v1305_v48 }
 0x3e8   : > { %vm3908_vm3 = vcmp.ne.s16.totalorder %v2509_v51, 0  ;;  %2744 = vmatpush3.bf16.msra.mxu1 %v2966_v37  ;;  %v3022_v37 = vld [vmem:[#allocation8] sm:$0xff]  }
 0x3e9   : > { %2745 = vmatprep.subr.bf16.mxu1 %v3384_v1 }
 0x3ec   : > { %2746 = vmatpush3.bf16.msra.mxu1 %v2967_v17  ;;  %v3023_v17 = vld [vmem:[#allocation8 + $0x48] sm:$0xff]  }
 0x3ed   : > { %2747 = vmatprep.subr.bf16.mxu1 %v3384_v1 }
 0x3f0   : > { %2748 = vmatpush3.bf16.msra.mxu1 %v2968_v39  ;;  %v3024_v39 = vld [vmem:[#allocation8 + $0x8] sm:$0xff]  }
 0x3f1   : > { %2749 = vmatprep.subr.bf16.mxu1 %v3384_v1 }
 0x3f4   : > { %2750 = vmatpush3.bf16.msra.mxu1 %v2969_v40  ;;  %v3025_v40 = vld [vmem:[#allocation8 + $0x50] sm:$0xff]  }
 0x3f5   : > { %2751 = vmatprep.subr.bf16.mxu1 %v3384_v1 }
 0x3f8   : > { %2752 = vmatpush3.bf16.msra.mxu1 %v2970_v41  ;;  %v3026_v41 = vld [vmem:[#allocation8 + $0x10] sm:$0xff]  }
 0x3f9   : > { %2753 = vmatprep.subr.bf16.mxu1 %v3384_v1 }
 0x3fc   : > { %2754 = vmatpush3.bf16.msra.mxu1 %v2971_v42  ;;  %v3027_v42 = vld [vmem:[#allocation8 + $0x58] sm:$0xff]  }
 0x3fd   : > { %2755 = vmatprep.subr.bf16.mxu1 %v3384_v1 }
 0x400   : > { %2756 = vmatpush3.bf16.msra.mxu1 %v2972_v46  ;;  %v3032_v46 = vld [vmem:[#allocation8 + $0x28] sm:$0xff]  }
 0x4ae   : > { %v2717_v52 = vpop.f32.mrb[8].mxu1 }
 0x4af   : > { %v1203_v54 = vpop.f32.mrb[9].mxu1 }
 0x4b0   : > { %v2718_v56 = vpop.f32.mrb[10].mxu1 }
 0x4b1   : > { %v1219_v58 = vpack.c.bf16 %v2718_v56, %v2717_v52  ;;  %v1206_v59 = vpop.f32.mrb[11].mxu1  ;;  %v2973_v52 = vld [vmem:[#allocation7] ss:$16 sps:$4 sm:$0xff]   ;;  %v2981_v56 = vld [vmem:[#allocation7 + $0x24] ss:$16 sps:$4 sm:$0xff]  }
 0x4b2   : > { %v1218_v61 = vpack.c.bf16 %v1206_v59, %v1203_v54  ;;  %v2976_v54 = vld [vmem:[#allocation7 + $0x8] ss:$16 sps:$4 sm:$0xff]  }
 0x4b3   : > { %v1327_v63 = vsel %vm3908_vm3, %v1219_v58, %v2962_v55  ;;  %v2978_v55 = vld [vmem:[#allocation7 + $0xc] ss:$16 sps:$4 sm:$0xff]   ;;  %v2979_v58 = vld [vmem:[#allocation7 + $0x20] ss:$16 sps:$4 sm:$0xff]   ;;  %v2982_v59 = vld [vmem:[#allocation7 + $0x28] ss:$16 sps:$4 sm:$0xff]  }
 0x4b4   : > { %v1326_v0 = vsel %vm3912_vm5, %v1218_v61, %v2961_v57  ;;  %v2516_v8 = vcombine.low %v1327_v63, %v1327_v63  ;;  %v2517_v11 = vcombine.high %v1327_v63, %v1327_v63  ;;  %v2984_v57 = vld [vmem:[#allocation7 + $0x2c] ss:$16 sps:$4 sm:$0xff]   ;;  %1839 = vmatprep.subr.bf16.mxu1 %v2978_v55 }
 0x4b5   : > { %v2514_v3 = vcombine.low %v1326_v0, %v1326_v0  ;;  %v2515_v4 = vcombine.high %v1326_v0, %v1326_v0  ;;  %2726 = vmatpush3.bf16.xpose.msra.mxu0 %v1326_v0  ;;  %v2990_v61 = vld [vmem:[#allocation7 + $0x4c] ss:$16 sps:$4 sm:$0xff]  }
 0x4b6   : > { %v2723_v6 = vpop.f32.mrb[12].mxu1  ;;  %2727 = vmatprep.subr.bf16.mxu0 %v3384_v1  ;;  %1362 = vst [vmem:[%s664_s28 + $0x8] sm:$0xf] %v2516_v8  ;;  %1363 = vst [vmem:[%s664_s28 + $0xc] sm:$0xf] %v2517_v11 }
 0x4b7   : > { %v1257_v7 = vpop.f32.mrb[13].mxu1  ;;  %1360 = vst [vmem:[%s664_s28] sm:$0xf] %v2514_v3  ;;  %1361 = vst [vmem:[%s664_s28 + $0x4] sm:$0xf] %v2515_v4  ;;  %v2993_v8 = vld [vmem:[#allocation7 + $0x64] ss:$16 sps:$4 sm:$0xff]  }
 0x4b8   : > { %v2724_v10 = vpop.f32.mrb[14].mxu1  ;;  %v2994_v11 = vld [vmem:[#allocation7 + $0x68] ss:$16 sps:$4 sm:$0xff]  }
 0x4b9   : > { %v1273_v13 = vpack.c.bf16 %v2724_v10, %v2723_v6  ;;  %v1260_v14 = vpop.f32.mrb[15].mxu1  ;;  %v2991_v10 = vld [vmem:[#allocation7 + $0x60] ss:$16 sps:$4 sm:$0xff]  }
 0x4ba   : > { %v1272_v15 = vpack.c.bf16 %v1260_v14, %v1257_v7  ;;  %v2997_v14 = vld [vmem:[#allocation7 + $0x80] ss:$16 sps:$4 sm:$0xff]  }
 0x4bb   : > { %v1345_v16 = vsel %vm3908_vm3, %v1273_v13, %v2964_v9  ;;  %v2996_v9 = vld [vmem:[#allocation7 + $0x6c] ss:$16 sps:$4 sm:$0xff]  }
 0x4bc   : > { %v1344_v18 = vsel %vm3912_vm5, %v1272_v15, %v2963_v12  ;;  %v2520_v21 = vcombine.low %v1345_v16, %v1345_v16  ;;  %v2521_v22 = vcombine.high %v1345_v16, %v1345_v16  ;;  %v2999_v12 = vld [vmem:[#allocation7 + $0x84] ss:$16 sps:$4 sm:$0xff]   ;;  %v3002_v13 = vld [vmem:[#allocation7 + $0x8c] ss:$16 sps:$4 sm:$0xff]  }
 0x4bd   : > { %2728 = vmatpush3.bf16.xpose.msra.mxu0 %v1327_v63  ;;  %v2518_v19 = vcombine.low %v1344_v18, %v1344_v18  ;;  %v2519_v20 = vcombine.high %v1344_v18, %v1344_v18  ;;  %v3005_v15 = vld [vmem:[#allocation7 + $0xa4] ss:$16 sps:$4 sm:$0xff]  }
 0x4be   : > { %2733 = vmatprep.subr.bf16.mxu0 %v3384_v1  ;;  %1380 = vst [vmem:[%s670_s8 + $0x8] sm:$0xf] %v2520_v21  ;;  %1381 = vst [vmem:[%s670_s8 + $0xc] sm:$0xf] %v2521_v22  ;;  %v3014_v21 = vld [vmem:[#allocation7 + $0xcc] ss:$16 sps:$4 sm:$0xff]  }
 0x4bf   : > { %1378 = vst [vmem:[%s670_s8] sm:$0xf] %v2518_v19  ;;  %1379 = vst [vmem:[%s670_s8 + $0x4] sm:$0xf] %v2519_v20  ;;  %v3006_v19 = vld [vmem:[#allocation7 + $0xa8] ss:$16 sps:$4 sm:$0xff]  }
 0x4c0   : > { %v3011_v20 = vld [vmem:[#allocation7 + $0xc4] ss:$16 sps:$4 sm:$0xff]   ;;  %v3009_v22 = vld [vmem:[#allocation7 + $0xc0] ss:$16 sps:$4 sm:$0xff]  }
 0x4c4   : > { %2730 = vmatmul.mubr.bf16.vlgmr.msra.gmra.mrb[8].mxu0 %v1382_v23  ;;  %v3012_v23 = vld [vmem:[#allocation7 + $0xc8] ss:$16 sps:$4 sm:$0xff]  }
 0x4c5   : > { %2734 = vmatpush3.bf16.msra.mxu0 %v1344_v18  ;;  %2737 = vmatprep.mubr.msk.bf16.mxu0 %vm3385_vm0, %v3384_v1  ;;  %v3003_v18 = vld [vmem:[#allocation7 + $0xa0] ss:$16 sps:$4 sm:$0xff]  }
 0x4c6   : > { %2735 = vmatprep.subr.bf16.mxu0 %v3384_v1 }
 0x4c9   : > { %2736 = vmatpush3.bf16.msra.mxu0 %v1345_v16  ;;  %v3008_v16 = vld [vmem:[#allocation7 + $0xac] ss:$16 sps:$4 sm:$0xff]  }
 0x4ca   : > { %1798 = vmatprep.subr.bf16.mxu0 %v2975_v53 }
 0x597   : > { %v1417_v25 = vpop.f32.mrb[8].mxu0 }
 0x598   : > { %v1427_v26 = vsel %vm1426_vm7, %v1417_v25, -1e+30  ;;  %v2731_v27 = vpop.f32.mrb[9].mxu0  ;;  %v3020_v25 = vld [vmem:[#allocation7 + $0xec] ss:$16 sps:$4 sm:$0xff]  }
 0x599   : > { %v1420_v28 = vpop.f32.mrb[10].mxu0  ;;  %v1429_v29 = vsel %vm1428_vm6, %v1427_v26, -inf  ;;  %v3018_v27 = vld [vmem:[#allocation7 + $0xe8] ss:$16 sps:$4 sm:$0xff]  }
 0x59a   : > { %1430 = vmax.xlane.f32.xlu0 %v1429_v29  ;;  %v2732_v30 = vpop.f32.mrb[11].mxu0 }
 0x627   : > { %v1431_v31 = vpop.xlane.xlu0 %1430 }
 0x628   : > { %v1432_v32 = vsub.f32 %v1427_v26, %v1431_v31  ;;  %v3015_v26 = vld [vmem:[#allocation7 + $0xe0] ss:$16 sps:$4 sm:$0xff]  }
 0x62a   : > { %v1433_v33 = vmul.f32 1.442695, %v1432_v32  ;;  %v2531_v32 = vld [vmem:[#allocation11] ss:$0 sm:$0xff] }
 0x62c   : > { %3047 = vpow2.f32 %v1433_v33 }
 0x636   : > { %v3048_v34 = vpop.eup %3047 }
 0x637   : > { %v1435_v35 = vsel %vm1428_vm6, %v3048_v34, 0.0 }
 0x638   : > { %1436 = vadd.xlane.f32.xlu1 %v1435_v35 }
 0x6c5   : > { %v1437_v2 = vpop.xlane.xlu1 %1436 }
 0x6c6   : > { %3049 = vrcp.f32 %v1437_v2  ;;  %v3028_v2 = vld [vmem:[#allocation8 + $0x18] sm:$0xff]  }
 0x6d0   : > { %v3050_v43 = vpop.eup %3049 }
 0x6d1   : > { %v1439_v44 = vmul.f32 %v3050_v43, %v3048_v34  ;;  %v3029_v43 = vld [vmem:[#allocation8 + $0x60] sm:$0xff]  }
 0x6d3   : > { %v1440_v45 = vpack.c.bf16 %v1439_v44, %v1439_v44  ;;  %v3030_v44 = vld [vmem:[#allocation8 + $0x20] sm:$0xff]  }
 0x6d5   : > { %2738 = vmatmul.mubr.msk.bf16.vlgmr.msra.gmra.mrb[12].mxu0 %vm1428_vm6, %v1440_v45  ;;  %v3031_v45 = vld [vmem:[#allocation8 + $0x68] sm:$0xff]  }
 0x6d6   : > { %1830 = vmatprep.mubr.bf16.mxu0 %v3386_v5  ;;  %1799 = vmatpush1.bf16.msra.mxu0 %v2973_v52 }
 0x6d7   : > { %1800 = vmatprep.subr.bf16.mxu0 %v2981_v56 }
 0x6da   : > { %1801 = vmatpush1.bf16.msra.mxu0 %v2979_v58 }
 0x6db   : > { %1802 = vmatprep.subr.bf16.mxu0 %v2987_v60 }
 0x6de   : > { %1803 = vmatpush1.bf16.msra.mxu0 %v2985_v62 }
 0x6df   : > { %1804 = vmatprep.subr.bf16.mxu0 %v2993_v8 }
 0x6e2   : > { %1805 = vmatpush1.bf16.msra.mxu0 %v2991_v10 }
 0x6e3   : > { %1806 = vmatprep.subr.bf16.mxu0 %v2999_v12  ;;  %v3037_v12 = vld [vmem:[#allocation14] sm:$0xff]  }
 0x6e6   : > { %1807 = vmatpush1.bf16.msra.mxu0 %v2997_v14  ;;  %v3039_v14 = vld [vmem:[#allocation14 + $0x10] sm:$0xff]  }
 0x6e7   : > { %1808 = vmatprep.subr.bf16.mxu0 %v3005_v15 }
 0x6ea   : > { %1809 = vmatpush1.bf16.msra.mxu0 %v3003_v18 }
 0x6eb   : > { %1810 = vmatprep.subr.bf16.mxu0 %v3011_v20 }
 0x6ee   : > { %1811 = vmatpush1.bf16.msra.mxu0 %v3009_v22  ;;  %v3040_v22 = vld [vmem:[#allocation14 + $0x18] sm:$0xff]  }
 0x6ef   : > { %1812 = vmatprep.subr.bf16.mxu0 %v3017_v24  ;;  %v3042_v24 = vld [vmem:[#allocation14 + $0x28] sm:$0xff]  }
 0x6f2   : > { %1813 = vmatpush1.bf16.msra.mxu0 %v3015_v26  ;;  %v3044_v26 = vld [vmem:[#allocation14 + $0x38] sm:$0xff]  }
 0x6f3   : > { %2636 = vmatprep.subr.bf16.mxu0 %v3021_v36 }
 0x7a8   : > { %v1478_v47 = vpop.f32.mrb[12].mxu0 }
 0x7a9   : > { %v1484_v48 = vpack.c.bf16 %v1478_v47, %v1478_v47  ;;  %v2739_v49 = vpop.f32.mrb[13].mxu0  ;;  %v3033_v47 = vld [vmem:[#allocation8 + $0x70] sm:$0xff]  }
 0x7aa   : > { %v1481_v50 = vpop.f32.mrb[14].mxu0  ;;  %v3035_v49 = vld [vmem:[#allocation8 + $0x78] sm:$0xff]  }
 0x7ab   : > { %v2740_v51 = vpop.f32.mrb[15].mxu0  ;;  %2758 = vmatmul.mubr.bf16.vlgmr.msra.gmra.mrb[16].mxu1 %v1484_v48  ;;  %v3034_v48 = vld [vmem:[#allocation8 + $0x30] sm:$0xff]   ;;  %v3036_v50 = vld [vmem:[#allocation8 + $0x38] sm:$0xff]  }
 0x7ac   : > { %1871 = vmatprep.mubr.bf16.mxu1 %v3386_v5  ;;  %1840 = vmatpush1.bf16.msra.mxu1 %v2976_v54  ;;  %v2988_v5 = vld [vmem:[#allocation7 + $0x48] ss:$16 sps:$4 sm:$0xff]  }
 0x7ad   : > { %1841 = vmatprep.subr.bf16.mxu1 %v2984_v57 }
 0x7b0   : > { %1842 = vmatpush1.bf16.msra.mxu1 %v2982_v59 }
 0x7b1   : > { %1843 = vmatprep.subr.bf16.mxu1 %v2990_v61 }
 0x7b4   : > { %1844 = vmatpush1.bf16.msra.mxu1 %v2988_v5 }
 0x7b5   : > { %1845 = vmatprep.subr.bf16.mxu1 %v2996_v9 }
 0x7b8   : > { %1846 = vmatpush1.bf16.msra.mxu1 %v2994_v11 }
 0x7b9   : > { %1847 = vmatprep.subr.bf16.mxu1 %v3002_v13  ;;  %v3038_v13 = vld [vmem:[#allocation14 + $0x8] sm:$0xff]  }
 0x87e   : > { %v1583_v63 = vpop.f32.mrb[16].mxu1 }
 0x87f   : > { %v3955_v0 = vadd.f32 %v1583_v63, %v3804_v38  ;;  %v2759_v3 = vpop.f32.mrb[17].mxu1  ;;  %v3000_v38 = vld [vmem:[#allocation7 + $0x88] ss:$16 sps:$4 sm:$0xff]  }
 0x880   : > { %v1586_v4 = vpop.f32.mrb[18].mxu1  ;;  %1848 = vmatpush1.bf16.msra.mxu1 %v3000_v38 }
 0x881   : > { %v2760_v6 = vpop.f32.mrb[19].mxu1  ;;  %v1591_v7 = vmul.f32 %v3955_v0, %v3955_v0  ;;  %1849 = vmatprep.subr.bf16.mxu1 %v3008_v16 }
 0x883   : > { %1592 = vadd.xlane.f32.xlu1 %v1591_v7 }
 0x884   : > { %1850 = vmatpush1.bf16.msra.mxu1 %v3006_v19 }
 0x885   : > { %1851 = vmatprep.subr.bf16.mxu1 %v3014_v21 }
 0x888   : > { %1852 = vmatpush1.bf16.msra.mxu1 %v3012_v23  ;;  %v3041_v23 = vld [vmem:[#allocation14 + $0x20] sm:$0xff]  }
 0x889   : > { %1853 = vmatprep.subr.bf16.mxu1 %v3020_v25  ;;  %v3043_v25 = vld [vmem:[#allocation14 + $0x30] sm:$0xff]  }
 0x88c   : > { %1854 = vmatpush1.bf16.msra.mxu1 %v3018_v27 }
 0x88d   : > { %2761 = vmatprep.subr.bf16.mxu1 %v3384_v1 }
 0x910   : > { %v1593_v28 = vpop.xlane.xlu1 %1592 }
 0x911   : > { %v1594_v29 = vmul.f32 0.0078125, %v1593_v28 }
 0x913   : > { %v1595_v30 = vadd.f32 1e-05, %v1594_v29 }
 0x915   : > { %3051 = vrsqrt.f32 %v1595_v30  ;;  %v2582_v30 = vld [vmem:[#allocation13] ss:$0 sm:$0xff] }
 0x91f   : > { %v3052_v31 = vpop.eup %3051 }
 0x920   : > { %v1597_v33 = vmul.f32 %v3052_v31, %v3955_v0 }
 0x922   : > { %v1604_v34 = vmul.f32 %v2531_v32, %v1597_v33 }
 0x924   : > { %v1605_v35 = vpack.c.bf16 %v1604_v34, %v1604_v34 }
 0x926   : > { %1831 = vmatmul.mubr.bf16.vlgmr.msra.gmra.mrb[16].mxu0 %v1605_v35  ;;  %1872 = vmatmul.mubr.bf16.vlgmr.msra.gmra.mrb[20].mxu1 %v1605_v35 }
 0x927   : > { %2777 = vmatprep.mubr.msk.bf16.mxu1 %vm3385_vm0, %v3384_v1  ;;  %2637 = vmatpush3.bf16.msra.mxu0 %v3022_v37 }
 0x928   : > { %2638 = vmatprep.subr.bf16.mxu0 %v3023_v17  ;;  %2762 = vmatpush3.bf16.msra.mxu1 %v3037_v12 }
 0x929   : > { %2763 = vmatprep.subr.bf16.mxu1 %v3384_v1 }
 0x92b   : > { %2639 = vmatpush3.bf16.msra.mxu0 %v3024_v39 }
 0x92c   : > { %2640 = vmatprep.subr.bf16.mxu0 %v3025_v40  ;;  %2764 = vmatpush3.bf16.msra.mxu1 %v3038_v13 }
 0x92d   : > { %2765 = vmatprep.subr.bf16.mxu1 %v3384_v1 }
 0x92f   : > { %2641 = vmatpush3.bf16.msra.mxu0 %v3026_v41 }
 0x930   : > { %2642 = vmatprep.subr.bf16.mxu0 %v3027_v42  ;;  %2766 = vmatpush3.bf16.msra.mxu1 %v3039_v14 }
 0x931   : > { %2767 = vmatprep.subr.bf16.mxu1 %v3384_v1 }
 0x933   : > { %2643 = vmatpush3.bf16.msra.mxu0 %v3028_v2 }
 0x934   : > { %2644 = vmatprep.subr.bf16.mxu0 %v3029_v43  ;;  %2768 = vmatpush3.bf16.msra.mxu1 %v3040_v22 }
 0x935   : > { %2769 = vmatprep.subr.bf16.mxu1 %v3384_v1 }
 0x937   : > { %2645 = vmatpush3.bf16.msra.mxu0 %v3030_v44 }
 0x938   : > { %2646 = vmatprep.subr.bf16.mxu0 %v3031_v45  ;;  %2770 = vmatpush3.bf16.msra.mxu1 %v3041_v23 }
 0x939   : > { %2771 = vmatprep.subr.bf16.mxu1 %v3384_v1 }
 0x93b   : > { %2647 = vmatpush3.bf16.msra.mxu0 %v3032_v46 }
 0x93c   : > { %2648 = vmatprep.subr.bf16.mxu0 %v3033_v47  ;;  %2772 = vmatpush3.bf16.msra.mxu1 %v3042_v24 }
 0x93d   : > { %2773 = vmatprep.subr.bf16.mxu1 %v3384_v1 }
 0x93f   : > { %2649 = vmatpush3.bf16.msra.mxu0 %v3034_v48 }
 0x940   : > { %2650 = vmatprep.subr.bf16.mxu0 %v3035_v49  ;;  %2774 = vmatpush3.bf16.msra.mxu1 %v3043_v25 }
 0x941   : > { %2775 = vmatprep.subr.bf16.mxu1 %v3384_v1 }
 0x943   : > { %2651 = vmatpush3.bf16.msra.mxu0 %v3036_v50 }
 0x944   : > { %2776 = vmatpush3.bf16.msra.mxu1 %v3044_v26 }
 0x9f9   : > { %v1832_v51 = vpop.f32.mrb[16].mxu0  ;;  %v1873_v52 = vpop.f32.mrb[20].mxu1 }
 0x9fa   : > { %v2564_v53 = vmul.f32 -1.442695, %v1832_v51  ;;  %v1834_v54 = vpop.f32.mrb[17].mxu0  ;;  %v1875_v55 = vpop.f32.mrb[21].mxu1 }
 0x9fb   : > { %v2565_v56 = vmul.f32 -1.442695, %v1834_v54  ;;  %v1836_v57 = vpop.f32.mrb[18].mxu0  ;;  %v1877_v58 = vpop.f32.mrb[22].mxu1 }
 0x9fc   : > { %3053 = vpow2.f32 %v2564_v53  ;;  %v1837_v59 = vpop.f32.mrb[19].mxu0  ;;  %v1878_v60 = vpop.f32.mrb[23].mxu1 }
 0x9fd   : > { %3055 = vpow2.f32 %v2565_v56 }
 0xa06   : > { %v3054_v61 = vpop.eup %3053 }
 0xa07   : > { %v3056_v62 = vpop.eup %3055  ;;  %v1886_v5 = vadd.f32 1.0, %v3054_v61 }
 0xa08   : > { %v1887_v63 = vadd.f32 1.0, %v3056_v62 }
 0xa09   : > { %3057 = vrcp.f32 %v1886_v5 }
 0xa0a   : > { %3059 = vrcp.f32 %v1887_v63 }
 0xa13   : > { %v3058_v3 = vpop.eup %3057 }
 0xa14   : > { %v3060_v4 = vpop.eup %3059  ;;  %v1892_v6 = vmul.f32 %v3058_v3, %v1832_v51 }
 0xa15   : > { %v1893_v7 = vmul.f32 %v3060_v4, %v1834_v54 }
 0xa16   : > { %v1894_v8 = vmul.f32 %v1892_v6, %v1873_v52 }
 0xa17   : > { %v1895_v9 = vmul.f32 %v1893_v7, %v1875_v55 }
 0xa18   : > { %v1896_v11 = vpack.c.bf16 %v1894_v8, %v1894_v8 }
 0xa19   : > { %v1897_v10 = vpack.c.bf16 %v1895_v9, %v1895_v9 }
 0xa1b   : > { %2058 = vmatprep.mubr.bf16.mxu0 %v1897_v10 }
 0xa1c   : > { %2059 = vmatmul.mubr.bf16.vlgmr.msra.gmra.mrb[20].mxu0 %v1896_v11 }
 0xaef   : > { %v2652_v38 = vpop.f32.mrb[20].mxu0 }
 0xaf0   : > { %v2653_v15 = vpop.f32.mrb[21].mxu0 }
 0xaf1   : > { %v2654_v16 = vadd.f32 %v2653_v15, %v2652_v38  ;;  %v2655_v18 = vpop.f32.mrb[22].mxu0 }
 0xaf2   : > { %v2656_v19 = vpop.f32.mrb[23].mxu0 }
 0xaf3   : > { %v2066_v20 = vadd.f32 %v2654_v16, %v3955_v0 }
 0xaf5   : > { %v2068_v21 = vmul.f32 %v2066_v20, %v2066_v20 }
 0xaf7   : > { %2069 = vadd.xlane.f32.xlu1 %v2068_v21 }
 0xb84   : > { %v2070_v0 = vpop.xlane.xlu1 %2069 }
 0xb85   : > { %v2071_v27 = vmul.f32 0.0078125, %v2070_v0 }
 0xb87   : > { %v2072_v28 = vadd.f32 1e-05, %v2071_v27 }
 0xb89   : > { %3061 = vrsqrt.f32 %v2072_v28 }
 0xb93   : > { %v3062_v29 = vpop.eup %3061 }
 0xb94   : > { %v2074_v31 = vmul.f32 %v3062_v29, %v2066_v20 }
 0xb96   : > { %v2081_v32 = vmul.f32 %v2582_v30, %v2074_v31 }
 0xb98   : > { %v2082_v33 = vpack.c.bf16 %v2081_v32, %v2081_v32 }
 0xb9a   : > { %2778 = vmatmul.mubr.bf16.vlgmr.msra.gmra.mrb[24].mxu1 %v2082_v33 }
 0xc6d   : > { %v2181_v1 = vpop.f32.mrb[24].mxu1 }
 0xc6e   : > { %2187 = vst [vmem:[%s629_s25] sm:$0xff] %v2181_v1  ;;  %v2779_v34 = vpop.f32.mrb[25].mxu1 }
 0xc6f   : > { %v2184_v35 = vpop.f32.mrb[26].mxu1 }
 0xc70   : > { %3300 = shalt.err (!%p3297_p12)
}
 0xc71   : > { %s3301_s28 = scalar_lea.hbm %s3978_s15, 128  ;;  %s3305_s6 = scalar_lea.hbm %s4093_s23, 256 }
 0xc72   : > { %p3302_p7 = scmp.ne.s32.totalorder %s3978_s15, %s3301_s28  ;;  %p3306_p13 = scmp.lt.u32.totalorder %s3978_s15, %s4093_s23 }
 0xc73   : > { %p3307_p1 = scmp.lt.u32.totalorder %s3305_s6, %s3301_s28  ;;  %p3309_p9 = scmp.lt.u32.totalorder %s3301_s28, %s3978_s15 }
 0xc74   : > { %p3303_p8 = pnand %p3302_p7, %p4094_p5 }
 0xc75   : > { %p3308_p6 = por %p3307_p1, %p3306_p13 }
 0xc76   : > { %p3304_p11 = pneg %p3303_p8 }
 0xc77   : > { %p3310_p0 = por %p3309_p9, %p3308_p6 }
 0xc79   : > { %p3311_p10 = pnand %p3310_p0, %p3304_p11 }
 0xc7b   : > { %3314 = shalt.err (!%p3311_p10)
}
 0xc7c   : > { %2817 = dma.vmem_to_hbm [thread:$0]  (%p4094_p5), %s3973_s21, 128, %s3978_s15, %s2189_s27   ;;  %v2780_v36 = vpop.f32.mrb[27].mxu1 }
 0xc7d PF: > { %s4095_s29 = sld [smem:[#allocation26_spill]]  ;;  %s4096_s17 = sld [smem:[#allocation23_spill]] }
 0xc7e   : > { %s4097_s25 = sld [smem:[#allocation30_spill]] }
 0xc83   : > { %p2864_p2 = scmp.ge.s32.totalorder %s4095_s29, 2  ;;  %s2232_s26 = sand.u32 1, %s4096_s17  }
 0xc84   : > { %p4098_p3 = scmp.ne.s32.totalorder %s4097_s25, 0  ;;  %s2233_s13 = scalar_lea.sflag [#allocation4], %s2232_s26 }
 0xc86   : > { %p2845_p4 = pnand %p2864_p2, %p4098_p3 }
 0xc88   : > { %3352 = dma.done.wait (!%p2845_p4), %s2233_s13, 128  }
 0xc89   : > { %3354 = vsyncadd (!%p2845_p4), %s2233_s13, 4294967168  ;;  %s4099_s21 = sld [smem:[#allocation27_spill]]  ;;  %s4100_s18 = sld [smem:[#allocation24_spill]] }
 0xc8a   : > { %s4101_s19 = sld [smem:[#allocation25_spill]]  ;;  %s4102_s20 = sld [smem:[#allocation28_spill]] }
 0xc8f   : > { %p31_p12 = scmp.ge.s32.totalorder %s4099_s21, 4  }
 0xc91   :  { %33 = sbr.rel (!%p31_p12) target bundleno = 15 (0xf), region = 170 }
 0xc98   :  { %2254 = vsyncpa [#allocation3], 1 }
 0xc99   :  { %2256 = vsyncpa [#allocation3 + $0x1], 1 }
 0xc9a   :  { %2257 = vsyncpa [#allocation6], 1 }
 0xc9b   :  { %2258 = vsyncpa [#allocation9], 1 }
 0xc9c   :  { %2259 = vsyncpa [#allocation12], 1 }
 0xc9d   :  { %2260 = vsyncpa [#allocation15], 1 }
 0xc9e   :  { %2261 = vsyncpa [#allocation4], 1 }
 0xc9f   :  { %2263 = vsyncpa [#allocation4 + $0x1], 1 }

</bundles_post_ra>
